<compile_context>
chip_gen: v7x
topology: tpu7x:2x2x1
jax: 0.10.0
libtpu: 0.0.40
codegen_flags: <defaults>
</compile_context>

<pallas_src>
import functools

import jax
import jax.numpy as jnp
from jax.experimental import pallas as pl
from jax.experimental.pallas import tpu as pltpu


def _round_up(x, m):
    return (x + m - 1) // m * m


def _detect_config():
    """Per-generation tile target / VMEM budget / minimum grid steps."""
    kind = ""
    try:
        kind = jax.devices()[0].device_kind.lower()
    except Exception:
        pass
    if "v7" in kind:
        # 64 MiB VMEM, 2 TensorCores -> keep >= 2 "parallel" grid steps.
        return {"tm_target": 512, "vmem_limit": 44 * 1024 * 1024, "min_grid": 2}
    if "v5" in kind or "v6" in kind:
        # 128 MiB VMEM, 1 TensorCore -> big tiles to reach the HBM roofline.
        return {"tm_target": 512, "vmem_limit": 96 * 1024 * 1024, "min_grid": 1}
    # Conservative fallback.
    return {"tm_target": 256, "vmem_limit": 32 * 1024 * 1024, "min_grid": 1}


_CFG = _detect_config()


def _compiler_params():
    return pltpu.CompilerParams(
        dimension_semantics=("parallel",),
        vmem_limit_bytes=_CFG["vmem_limit"],
    )


# ----------------------------- Pallas kernels -----------------------------

def _conv_act_kernel(x_ref, w_ref, b_ref, o_ref, *, act):
    """GEMM tile: patches @ weight (bf16 in, f32 acc) + bias + activation."""
    y = jnp.dot(x_ref[...], w_ref[...], preferred_element_type=jnp.float32)
    y = y + b_ref[...]
    if act == "lrelu":
        y = jnp.where(y > 0, y, 0.2 * y)
    elif act == "sigmoid":
        y = jax.nn.sigmoid(y)
    o_ref[...] = y.astype(o_ref.dtype)


def _conv_stats_kernel(x_ref, w_ref, o_ref, sum_ref, sq_ref):
    """GEMM tile (no bias) + fused per-tile BN partial statistics (f32)."""
    y = jnp.dot(x_ref[...], w_ref[...], preferred_element_type=jnp.float32)
    o_ref[...] = y.astype(o_ref.dtype)          # bf16 activation store
    s = jnp.sum(y, axis=0, keepdims=True)
    sq = jnp.sum(y * y, axis=0, keepdims=True)
    # 8 identical copies per tile (satisfies the (8,128) block constraint);
    # the host sums all rows and divides by 8 (exact in f32).
    sum_ref[...] = jnp.broadcast_to(s, sum_ref.shape)
    sq_ref[...] = jnp.broadcast_to(sq, sq_ref.shape)


# --------------------------- pallas_call wrappers --------------------------

def conv_act(patches, w, b, act, tm, out_dtype):
    M_pad, K = patches.shape
    npad = w.shape[1]
    grid_m = M_pad // tm
    return pl.pallas_call(
        functools.partial(_conv_act_kernel, act=act),
        out_shape=jax.ShapeDtypeStruct((M_pad, npad), out_dtype),
        grid=(grid_m,),
        in_specs=[
            pl.BlockSpec((tm, K), lambda i: (i, 0)),
            pl.BlockSpec((K, npad), lambda i: (0, 0)),   # resident weight
            pl.BlockSpec((1, npad), lambda i: (0, 0)),   # resident bias
        ],
        out_specs=pl.BlockSpec((tm, npad), lambda i: (i, 0)),
        compiler_params=_compiler_params(),
    )(patches, w, b)


def conv_stats(patches, w, tm):
    M_pad, K = patches.shape
    npad = w.shape[1]
    grid_m = M_pad // tm
    return pl.pallas_call(
        _conv_stats_kernel,
        out_shape=(
            jax.ShapeDtypeStruct((M_pad, npad), jnp.bfloat16),
            jax.ShapeDtypeStruct((grid_m * 8, npad), jnp.float32),
            jax.ShapeDtypeStruct((grid_m * 8, npad), jnp.float32),
        ),
        grid=(grid_m,),
        in_specs=[
            pl.BlockSpec((tm, K), lambda i: (i, 0)),
            pl.BlockSpec((K, npad), lambda i: (0, 0)),   # resident weight
        ],
        out_specs=(
            pl.BlockSpec((tm, npad), lambda i: (i, 0)),
            pl.BlockSpec((8, npad), lambda i: (i, 0)),   # per-tile partial sums
            pl.BlockSpec((8, npad), lambda i: (i, 0)),   # per-tile partial sq-sums
        ),
        compiler_params=_compiler_params(),
    )(patches, w)


# ------------------------------- JAX glue ---------------------------------

def pick_tiling(M, K, npad, out_bytes):
    """VMEM-bounded M-tile; >=2 grid steps on 2-TensorCore chips when possible."""
    m8 = _round_up(max(M, 1), 8)
    budget = _CFG["vmem_limit"] - 4 * K * npad            # 2x bf16 weight buffers
    per_row = 2 * (2 * K + out_bytes * npad)               # patches + out, 2x buffered
    tm = min(_CFG["tm_target"], max(8, (budget // max(per_row, 1)) // 8 * 8))
    if _CFG["min_grid"] > 1 and m8 >= 16:
        tm = min(tm, _round_up(pl.cdiv(m8, _CFG["min_grid"]), 8))
    tm = min(tm, m8)
    m_pad = _round_up(m8, tm)
    return tm, m_pad


def im2col_nhwc(x, kh, kw, stride, pad):
    """x: NHWC (channels already padded) -> patches [N*OH*OW, KH*KW*C]."""
    N, H, W, C = x.shape
    xp = jnp.pad(x, ((0, 0), (pad, pad), (pad, pad), (0, 0)))
    OH = (H + 2 * pad - kh) // stride + 1
    OW = (W + 2 * pad - kw) // stride + 1
    cols = []
    for i in range(kh):
        for j in range(kw):
            cols.append(xp[:, i:i + stride * OH:stride, j:j + stride * OW:stride, :])
    patches = jnp.stack(cols, axis=3)                 # (N, OH, OW, KH*KW, C)
    return patches.reshape(N * OH * OW, kh * kw * C), OH, OW


def prep_weight(w, cin_pad, cout_pad):
    """torch (Cout,Cin,KH,KW) -> bf16 (KH*KW*Cin_pad, Cout_pad), matching patch order."""
    Cout, Cin, KH, KW = w.shape
    wt = jnp.transpose(w, (2, 3, 1, 0))               # (KH, KW, Cin, Cout)
    wt = jnp.pad(wt, ((0, 0), (0, 0), (0, cin_pad - Cin), (0, cout_pad - Cout)))
    return wt.reshape(KH * KW * cin_pad, cout_pad).astype(jnp.bfloat16)


def conv_gemm(x_nhwc, w, b, stride, pad, mode, out_dtype=jnp.bfloat16):
    """mode: 'lrelu' | 'sigmoid' | 'stats' (stats = no bias, fused BN sums)."""
    Cout, Cin, KH, KW = w.shape
    cin_pad = _round_up(Cin, 8)                       # only pad Cin to 8 (K mult of 128)
    cout_pad = _round_up(Cout, 128)
    if x_nhwc.shape[-1] != cin_pad:
        x_nhwc = jnp.pad(x_nhwc, ((0, 0), (0, 0), (0, 0),
                                  (0, cin_pad - x_nhwc.shape[-1])))
    patches, OH, OW = im2col_nhwc(x_nhwc, KH, KW, stride, pad)
    M, K = patches.shape
    out_bytes = 2 if out_dtype == jnp.bfloat16 else 4
    tm, M_pad = pick_tiling(M, K, cout_pad, out_bytes)
    if M_pad > M:
        patches = jnp.pad(patches, ((0, M_pad - M), (0, 0)))   # zero rows: stats-safe
    patches = patches.astype(jnp.bfloat16)
    w2 = prep_weight(w, cin_pad, cout_pad)
    if mode == "stats":
        y, psum, psq = conv_stats(patches, w2, tm)
        return y, psum, psq, M, OH, OW
    b2 = jnp.pad(b.astype(jnp.float32), (0, cout_pad - Cout)).reshape(1, cout_pad)
    y = conv_act(patches, w2, b2, mode, tm, out_dtype)
    return y, M, OH, OW


def bn_conv_layer(x, w, gamma, beta, eps=1e-5):
    """conv (s=2, p=1, fused BN stats) + training-mode BatchNorm2d + leaky_relu(0.2).

    BN apply + leaky_relu is plain JAX so XLA fuses it with the next layer's
    im2col read; conv bias is absorbed by the BN mean subtraction and skipped.
    """
    N = x.shape[0]
    Cout = w.shape[0]
    y, psum, psq, M, OH, OW = conv_gemm(x, w, None, 2, 1, "stats")
    # each tile wrote 8 identical copies of its partial sums -> /8 is exact
    s = jnp.sum(psum, axis=0)[:Cout] * 0.125
    sq = jnp.sum(psq, axis=0)[:Cout] * 0.125
    mean = s / M
    var = jnp.maximum(sq / M - mean * mean, 0.0)      # biased variance (PyTorch norm)
    scale = gamma / jnp.sqrt(var + eps)
    shift = beta - mean * scale
    # channel-compact slice + folded BN + leaky_relu (fused by XLA with im2col)
    yr = y[:M, :Cout].astype(jnp.float32)
    ya = yr * scale + shift
    ya = jnp.where(ya > 0, ya, 0.2 * ya).astype(jnp.bfloat16)
    return ya.reshape(N, OH, OW, Cout)


def discriminator_forward(x_nchw, params):
    N = x_nchw.shape[0]
    # NCHW -> NHWC once; bf16 activations everywhere except the final output.
    x = jnp.transpose(x_nchw, (0, 2, 3, 1)).astype(jnp.bfloat16)

    # conv1 + leaky_relu (bias + activation fused into the GEMM epilogue)
    y, M, OH, OW = conv_gemm(x, params["w1"], params["b1"], 2, 1, "lrelu",
                             out_dtype=jnp.bfloat16)
    c1 = params["w1"].shape[0]
    x = y[:M, :c1].reshape(N, OH, OW, c1)             # channel-compact

    # conv2..conv4: conv (fused BN stats) + batchnorm apply + leaky_relu.
    for idx in (2, 3, 4):
        x = bn_conv_layer(x, params[f"w{idx}"], params[f"g{idx}"],
                          params[f"beta{idx}"])

    # conv5 (k=4, s=1, p=0) + sigmoid — final output stays f32
    y, M, OH, OW = conv_gemm(x, params["w5"], params["b5"], 1, 0, "sigmoid",
                             out_dtype=jnp.float32)
    out = y[:M, :1].reshape(N, OH, OW, 1)
    return jnp.transpose(out, (0, 3, 1, 2))           # NCHW (N, 1, 1, 1)


# ---------------------------- parameter setup ------------------------------

def init_params(key, d):
    keys = jax.random.split(key, 5)

    def conv_w(k, cout, cin):
        # normal_init(mean=0.0, std=0.02), bias zero — as in weight_init
        return jax.random.normal(k, (cout, cin, 4, 4), jnp.float32) * 0.02

    p = {}
    p["w1"], p["b1"] = conv_w(keys[0], d, 3), jnp.zeros((d,), jnp.float32)
    p["w2"], p["b2"] = conv_w(keys[1], d * 2, d), jnp.zeros((d * 2,), jnp.float32)
    p["w3"], p["b3"] = conv_w(keys[2], d * 4, d * 2), jnp.zeros((d * 4,), jnp.float32)
    p["w4"], p["b4"] = conv_w(keys[3], d * 8, d * 4), jnp.zeros((d * 8,), jnp.float32)
    p["w5"], p["b5"] = conv_w(keys[4], 1, d * 8), jnp.zeros((1,), jnp.float32)
    for idx, c in ((2, d * 2), (3, d * 4), (4, d * 8)):
        p[f"g{idx}"] = jnp.ones((c,), jnp.float32)     # BatchNorm2d default init
        p[f"beta{idx}"] = jnp.zeros((c,), jnp.float32)
    return p


if __name__ == "__main__":
    key = jax.random.PRNGKey(0)
    k_x, k_p = jax.random.split(key)

    # Small config: batch=2, d=8; spatial must be 64 so that after four
    # stride-2 convs the 4x4 valid conv5 produces a 1x1 output (DCGAN geometry).
    d = 8
    x = jax.random.normal(k_x, (2, 3, 64, 64), jnp.float32)
    params = init_params(k_p, d)

    fwd = jax.jit(discriminator_forward)
    out = jax.block_until_ready(fwd(x, params))
    assert out.shape == (2, 1, 1, 1), out.shape
    assert bool(jnp.all(jnp.isfinite(out)))
    assert bool(jnp.all((out >= 0.0) & (out <= 1.0)))
    print("KERNEL_OK")
</pallas_src>

<mosaic_0001>
module attributes {stable_mosaic.version = 11 : i64} {
  func.func @_conv_act_kernel(%arg0: i32, %arg1: memref<256x128xbf16, #tpu.memory_space<vmem>>, %arg2: memref<128x128xbf16, #tpu.memory_space<vmem>>, %arg3: memref<1x128xf32, #tpu.memory_space<vmem>>, %arg4: memref<256x128xbf16, #tpu.memory_space<vmem>>) attributes {dimension_semantics = [#tpu.dimension_semantics<parallel>], iteration_bounds = array<i64: 8>, scalar_prefetch = 0 : i64, scratch_operands = 0 : i64, tpu.core_type = #tpu.core_type<tc>, window_params = [{transform_indices = @transform_0, window_bounds = array<i64: 256, 128>}, {pipeline_mode = #tpu.pipeline_mode<synchronous>, transform_indices = @transform_1, window_bounds = array<i64: 128, 128>}, {pipeline_mode = #tpu.pipeline_mode<synchronous>, transform_indices = @transform_2, window_bounds = array<i64: 1, 128>}, {transform_indices = @transform_3, window_bounds = array<i64: 256, 128>}]} {
    %c0 = arith.constant 0 : index
    %c0_0 = arith.constant 0 : index
    %0 = vector.load %arg1[%c0, %c0_0] : memref<256x128xbf16, #tpu.memory_space<vmem>>, vector<256x128xbf16>
    %c0_1 = arith.constant 0 : index
    %c0_2 = arith.constant 0 : index
    %1 = vector.load %arg2[%c0_1, %c0_2] : memref<128x128xbf16, #tpu.memory_space<vmem>>, vector<128x128xbf16>
    %cst = arith.constant dense<0.000000e+00> : vector<256x128xf32>
    %2 = tpu.matmul %0, %1, %cst {dimension_numbers = #tpu.dot_dimension_numbers<[1], [0], [0], [1], [0, 0, 1, 1], [], []>} : vector<256x128xbf16>, vector<128x128xbf16>, vector<256x128xf32> -> vector<256x128xf32>
    %c0_3 = arith.constant 0 : index
    %c0_4 = arith.constant 0 : index
    %3 = vector.load %arg3[%c0_3, %c0_4] : memref<1x128xf32, #tpu.memory_space<vmem>>, vector<1x128xf32>
    %4 = vector.broadcast %3 : vector<1x128xf32> to vector<256x128xf32>
    %5 = arith.addf %2, %4 : vector<256x128xf32>
    %cst_5 = arith.constant 0.000000e+00 : f32
    %6 = vector.broadcast %cst_5 : f32 to vector<256x128xf32>
    %7 = arith.cmpf ogt, %5, %6 : vector<256x128xf32>
    %cst_6 = arith.constant 2.000000e-01 : f32
    %8 = vector.broadcast %cst_6 : f32 to vector<256x128xf32>
    %9 = arith.mulf %8, %5 : vector<256x128xf32>
    %10 = arith.select %7, %5, %9 : vector<256x128xi1>, vector<256x128xf32>
    %11 = arith.truncf %10 : vector<256x128xf32> to vector<256x128xbf16>
    %c0_7 = arith.constant 0 : index
    %c0_8 = arith.constant 0 : index
    %12 = vector.load %arg4[%c0_7, %c0_8] : memref<256x128xbf16, #tpu.memory_space<vmem>>, vector<256x128xbf16>
    tpu.vector_store %arg4[%c0_7, %c0_8], %11 {strides = array<i32>} : memref<256x128xbf16, #tpu.memory_space<vmem>>, vector<256x128xbf16>,
    return
  }
  func.func @transform_0(%arg0: i32) -> (i32, i32) {
    %c0_i32 = arith.constant 0 : i32
    %c0_i32_0 = arith.constant 0 : i32
    return %arg0, %c0_i32 : i32, i32
  }
  func.func @transform_1(%arg0: i32) -> (i32, i32) {
    %c0_i32 = arith.constant 0 : i32
    %c0_i32_0 = arith.constant 0 : i32
    %c0_i32_1 = arith.constant 0 : i32
    return %c0_i32, %c0_i32_0 : i32, i32
  }
  func.func @transform_2(%arg0: i32) -> (i32, i32) {
    %c0_i32 = arith.constant 0 : i32
    %c0_i32_0 = arith.constant 0 : i32
    %c0_i32_1 = arith.constant 0 : i32
    return %c0_i32, %c0_i32_0 : i32, i32
  }
  func.func @transform_3(%arg0: i32) -> (i32, i32) {
    %c0_i32 = arith.constant 0 : i32
    %c0_i32_0 = arith.constant 0 : i32
    return %arg0, %c0_i32 : i32, i32
  }
}

module attributes {stable_mosaic.version = 11 : i64} {
  func.func @_conv_stats_kernel(%arg0: i32, %arg1: memref<256x128xbf16, #tpu.memory_space<vmem>>, %arg2: memref<128x128xbf16, #tpu.memory_space<vmem>>, %arg3: memref<256x128xbf16, #tpu.memory_space<vmem>>, %arg4: memref<8x128xf32, #tpu.memory_space<vmem>>, %arg5: memref<8x128xf32, #tpu.memory_space<vmem>>) attributes {dimension_semantics = [#tpu.dimension_semantics<parallel>], iteration_bounds = array<i64: 2>, scalar_prefetch = 0 : i64, scratch_operands = 0 : i64, tpu.core_type = #tpu.core_type<tc>, window_params = [{transform_indices = @transform_0, window_bounds = array<i64: 256, 128>}, {pipeline_mode = #tpu.pipeline_mode<synchronous>, transform_indices = @transform_1, window_bounds = array<i64: 128, 128>}, {transform_indices = @transform_2, window_bounds = array<i64: 256, 128>}, {transform_indices = @transform_3, window_bounds = array<i64: 8, 128>}, {transform_indices = @transform_4, window_bounds = array<i64: 8, 128>}]} {
    %c0 = arith.constant 0 : index
    %c0_0 = arith.constant 0 : index
    %0 = vector.load %arg1[%c0, %c0_0] : memref<256x128xbf16, #tpu.memory_space<vmem>>, vector<256x128xbf16>
    %c0_1 = arith.constant 0 : index
    %c0_2 = arith.constant 0 : index
    %1 = vector.load %arg2[%c0_1, %c0_2] : memref<128x128xbf16, #tpu.memory_space<vmem>>, vector<128x128xbf16>
    %cst = arith.constant dense<0.000000e+00> : vector<256x128xf32>
    %2 = tpu.matmul %0, %1, %cst {dimension_numbers = #tpu.dot_dimension_numbers<[1], [0], [0], [1], [0, 0, 1, 1], [], []>} : vector<256x128xbf16>, vector<128x128xbf16>, vector<256x128xf32> -> vector<256x128xf32>
    %3 = arith.truncf %2 : vector<256x128xf32> to vector<256x128xbf16>
    %c0_3 = arith.constant 0 : index
    %c0_4 = arith.constant 0 : index
    %4 = vector.load %arg3[%c0_3, %c0_4] : memref<256x128xbf16, #tpu.memory_space<vmem>>, vector<256x128xbf16>
    tpu.vector_store %arg3[%c0_3, %c0_4], %3 {strides = array<i32>} : memref<256x128xbf16, #tpu.memory_space<vmem>>, vector<256x128xbf16>,
    %cst_5 = arith.constant dense<0.000000e+00> : vector<128xf32>
    %5 = vector.multi_reduction <add>, %2, %cst_5 [0] : vector<256x128xf32> to vector<128xf32>
    %6 = vector.shape_cast %5 : vector<128xf32> to vector<1x128xf32>
    %7 = arith.mulf %2, %2 : vector<256x128xf32>
    %cst_6 = arith.constant dense<0.000000e+00> : vector<128xf32>
    %8 = vector.multi_reduction <add>, %7, %cst_6 [0] : vector<256x128xf32> to vector<128xf32>
    %9 = vector.shape_cast %8 : vector<128xf32> to vector<1x128xf32>
    %10 = vector.shape_cast %6 : vector<1x128xf32> to vector<1x128xf32>
    %11 = vector.broadcast %10 : vector<1x128xf32> to vector<8x128xf32>
    %c0_7 = arith.constant 0 : index
    %c0_8 = arith.constant 0 : index
    %12 = vector.load %arg4[%c0_7, %c0_8] : memref<8x128xf32, #tpu.memory_space<vmem>>, vector<8x128xf32>
    tpu.vector_store %arg4[%c0_7, %c0_8], %11 {strides = array<i32>} : memref<8x128xf32, #tpu.memory_space<vmem>>, vector<8x128xf32>,
    %13 = vector.shape_cast %9 : vector<1x128xf32> to vector<1x128xf32>
    %14 = vector.broadcast %13 : vector<1x128xf32> to vector<8x128xf32>
    %c0_9 = arith.constant 0 : index
    %c0_10 = arith.constant 0 : index
    %15 = vector.load %arg5[%c0_9, %c0_10] : memref<8x128xf32, #tpu.memory_space<vmem>>, vector<8x128xf32>
    tpu.vector_store %arg5[%c0_9, %c0_10], %14 {strides = array<i32>} : memref<8x128xf32, #tpu.memory_space<vmem>>, vector<8x128xf32>,
    return
  }
  func.func @transform_0(%arg0: i32) -> (i32, i32) {
    %c0_i32 = arith.constant 0 : i32
    %c0_i32_0 = arith.constant 0 : i32
    return %arg0, %c0_i32 : i32, i32
  }
  func.func @transform_1(%arg0: i32) -> (i32, i32) {
    %c0_i32 = arith.constant 0 : i32
    %c0_i32_0 = arith.constant 0 : i32
    %c0_i32_1 = arith.constant 0 : i32
    return %c0_i32, %c0_i32_0 : i32, i32
  }
  func.func @transform_2(%arg0: i32) -> (i32, i32) {
    %c0_i32 = arith.constant 0 : i32
    %c0_i32_0 = arith.constant 0 : i32
    return %arg0, %c0_i32 : i32, i32
  }
  func.func @transform_3(%arg0: i32) -> (i32, i32) {
    %c0_i32 = arith.constant 0 : i32
    %c0_i32_0 = arith.constant 0 : i32
    return %arg0, %c0_i32 : i32, i32
  }
  func.func @transform_4(%arg0: i32) -> (i32, i32) {
    %c0_i32 = arith.constant 0 : i32
    %c0_i32_0 = arith.constant 0 : i32
    return %arg0, %c0_i32 : i32, i32
  }
}

module attributes {stable_mosaic.version = 11 : i64} {
  func.func @_conv_stats_kernel(%arg0: i32, %arg1: memref<128x256xbf16, #tpu.memory_space<vmem>>, %arg2: memref<256x128xbf16, #tpu.memory_space<vmem>>, %arg3: memref<128x128xbf16, #tpu.memory_space<vmem>>, %arg4: memref<8x128xf32, #tpu.memory_space<vmem>>, %arg5: memref<8x128xf32, #tpu.memory_space<vmem>>) attributes {dimension_semantics = [#tpu.dimension_semantics<parallel>], iteration_bounds = array<i64: 1>, scalar_prefetch = 0 : i64, scratch_operands = 0 : i64, tpu.core_type = #tpu.core_type<tc>, window_params = [{transform_indices = @transform_0, window_bounds = array<i64: 128, 256>}, {pipeline_mode = #tpu.pipeline_mode<synchronous>, transform_indices = @transform_1, window_bounds = array<i64: 256, 128>}, {transform_indices = @transform_2, window_bounds = array<i64: 128, 128>}, {transform_indices = @transform_3, window_bounds = array<i64: 8, 128>}, {transform_indices = @transform_4, window_bounds = array<i64: 8, 128>}]} {
    %c0 = arith.constant 0 : index
    %c0_0 = arith.constant 0 : index
    %0 = vector.load %arg1[%c0, %c0_0] : memref<128x256xbf16, #tpu.memory_space<vmem>>, vector<128x256xbf16>
    %c0_1 = arith.constant 0 : index
    %c0_2 = arith.constant 0 : index
    %1 = vector.load %arg2[%c0_1, %c0_2] : memref<256x128xbf16, #tpu.memory_space<vmem>>, vector<256x128xbf16>
    %cst = arith.constant dense<0.000000e+00> : vector<128x128xf32>
    %2 = tpu.matmul %0, %1, %cst {dimension_numbers = #tpu.dot_dimension_numbers<[1], [0], [0], [1], [0, 0, 1, 1], [], []>} : vector<128x256xbf16>, vector<256x128xbf16>, vector<128x128xf32> -> vector<128x128xf32>
    %3 = arith.truncf %2 : vector<128x128xf32> to vector<128x128xbf16>
    %c0_3 = arith.constant 0 : index
    %c0_4 = arith.constant 0 : index
    %4 = vector.load %arg3[%c0_3, %c0_4] : memref<128x128xbf16, #tpu.memory_space<vmem>>, vector<128x128xbf16>
    tpu.vector_store %arg3[%c0_3, %c0_4], %3 {strides = array<i32>} : memref<128x128xbf16, #tpu.memory_space<vmem>>, vector<128x128xbf16>,
    %cst_5 = arith.constant dense<0.000000e+00> : vector<128xf32>
    %5 = vector.multi_reduction <add>, %2, %cst_5 [0] : vector<128x128xf32> to vector<128xf32>
    %6 = vector.shape_cast %5 : vector<128xf32> to vector<1x128xf32>
    %7 = arith.mulf %2, %2 : vector<128x128xf32>
    %cst_6 = arith.constant dense<0.000000e+00> : vector<128xf32>
    %8 = vector.multi_reduction <add>, %7, %cst_6 [0] : vector<128x128xf32> to vector<128xf32>
    %9 = vector.shape_cast %8 : vector<128xf32> to vector<1x128xf32>
    %10 = vector.shape_cast %6 : vector<1x128xf32> to vector<1x128xf32>
    %11 = vector.broadcast %10 : vector<1x128xf32> to vector<8x128xf32>
    %c0_7 = arith.constant 0 : index
    %c0_8 = arith.constant 0 : index
    %12 = vector.load %arg4[%c0_7, %c0_8] : memref<8x128xf32, #tpu.memory_space<vmem>>, vector<8x128xf32>
    tpu.vector_store %arg4[%c0_7, %c0_8], %11 {strides = array<i32>} : memref<8x128xf32, #tpu.memory_space<vmem>>, vector<8x128xf32>,
    %13 = vector.shape_cast %9 : vector<1x128xf32> to vector<1x128xf32>
    %14 = vector.broadcast %13 : vector<1x128xf32> to vector<8x128xf32>
    %c0_9 = arith.constant 0 : index
    %c0_10 = arith.constant 0 : index
    %15 = vector.load %arg5[%c0_9, %c0_10] : memref<8x128xf32, #tpu.memory_space<vmem>>, vector<8x128xf32>
    tpu.vector_store %arg5[%c0_9, %c0_10], %14 {strides = array<i32>} : memref<8x128xf32, #tpu.memory_space<vmem>>, vector<8x128xf32>,
    return
  }
  func.func @transform_0(%arg0: i32) -> (i32, i32) {
    %c0_i32 = arith.constant 0 : i32
    %c0_i32_0 = arith.constant 0 : i32
    return %arg0, %c0_i32 : i32, i32
  }
  func.func @transform_1(%arg0: i32) -> (i32, i32) {
    %c0_i32 = arith.constant 0 : i32
    %c0_i32_0 = arith.constant 0 : i32
    %c0_i32_1 = arith.constant 0 : i32
    return %c0_i32, %c0_i32_0 : i32, i32
  }
  func.func @transform_2(%arg0: i32) -> (i32, i32) {
    %c0_i32 = arith.constant 0 : i32
    %c0_i32_0 = arith.constant 0 : i32
    return %arg0, %c0_i32 : i32, i32
  }
  func.func @transform_3(%arg0: i32) -> (i32, i32) {
    %c0_i32 = arith.constant 0 : i32
    %c0_i32_0 = arith.constant 0 : i32
    return %arg0, %c0_i32 : i32, i32
  }
  func.func @transform_4(%arg0: i32) -> (i32, i32) {
    %c0_i32 = arith.constant 0 : i32
    %c0_i32_0 = arith.constant 0 : i32
    return %arg0, %c0_i32 : i32, i32
  }
}

module attributes {stable_mosaic.version = 11 : i64} {
  func.func @_conv_stats_kernel(%arg0: i32, %arg1: memref<32x512xbf16, #tpu.memory_space<vmem>>, %arg2: memref<512x128xbf16, #tpu.memory_space<vmem>>, %arg3: memref<32x128xbf16, #tpu.memory_space<vmem>>, %arg4: memref<8x128xf32, #tpu.memory_space<vmem>>, %arg5: memref<8x128xf32, #tpu.memory_space<vmem>>) attributes {dimension_semantics = [#tpu.dimension_semantics<parallel>], iteration_bounds = array<i64: 1>, scalar_prefetch = 0 : i64, scratch_operands = 0 : i64, tpu.core_type = #tpu.core_type<tc>, window_params = [{transform_indices = @transform_0, window_bounds = array<i64: 32, 512>}, {pipeline_mode = #tpu.pipeline_mode<synchronous>, transform_indices = @transform_1, window_bounds = array<i64: 512, 128>}, {transform_indices = @transform_2, window_bounds = array<i64: 32, 128>}, {transform_indices = @transform_3, window_bounds = array<i64: 8, 128>}, {transform_indices = @transform_4, window_bounds = array<i64: 8, 128>}]} {
    %c0 = arith.constant 0 : index
    %c0_0 = arith.constant 0 : index
    %0 = vector.load %arg1[%c0, %c0_0] : memref<32x512xbf16, #tpu.memory_space<vmem>>, vector<32x512xbf16>
    %c0_1 = arith.constant 0 : index
    %c0_2 = arith.constant 0 : index
    %1 = vector.load %arg2[%c0_1, %c0_2] : memref<512x128xbf16, #tpu.memory_space<vmem>>, vector<512x128xbf16>
    %cst = arith.constant dense<0.000000e+00> : vector<32x128xf32>
    %2 = tpu.matmul %0, %1, %cst {dimension_numbers = #tpu.dot_dimension_numbers<[1], [0], [0], [1], [0, 0, 1, 1], [], []>} : vector<32x512xbf16>, vector<512x128xbf16>, vector<32x128xf32> -> vector<32x128xf32>
    %3 = arith.truncf %2 : vector<32x128xf32> to vector<32x128xbf16>
    %c0_3 = arith.constant 0 : index
    %c0_4 = arith.constant 0 : index
    %4 = vector.load %arg3[%c0_3, %c0_4] : memref<32x128xbf16, #tpu.memory_space<vmem>>, vector<32x128xbf16>
    tpu.vector_store %arg3[%c0_3, %c0_4], %3 {strides = array<i32>} : memref<32x128xbf16, #tpu.memory_space<vmem>>, vector<32x128xbf16>,
    %cst_5 = arith.constant dense<0.000000e+00> : vector<128xf32>
    %5 = vector.multi_reduction <add>, %2, %cst_5 [0] : vector<32x128xf32> to vector<128xf32>
    %6 = vector.shape_cast %5 : vector<128xf32> to vector<1x128xf32>
    %7 = arith.mulf %2, %2 : vector<32x128xf32>
    %cst_6 = arith.constant dense<0.000000e+00> : vector<128xf32>
    %8 = vector.multi_reduction <add>, %7, %cst_6 [0] : vector<32x128xf32> to vector<128xf32>
    %9 = vector.shape_cast %8 : vector<128xf32> to vector<1x128xf32>
    %10 = vector.shape_cast %6 : vector<1x128xf32> to vector<1x128xf32>
    %11 = vector.broadcast %10 : vector<1x128xf32> to vector<8x128xf32>
    %c0_7 = arith.constant 0 : index
    %c0_8 = arith.constant 0 : index
    %12 = vector.load %arg4[%c0_7, %c0_8] : memref<8x128xf32, #tpu.memory_space<vmem>>, vector<8x128xf32>
    tpu.vector_store %arg4[%c0_7, %c0_8], %11 {strides = array<i32>} : memref<8x128xf32, #tpu.memory_space<vmem>>, vector<8x128xf32>,
    %13 = vector.shape_cast %9 : vector<1x128xf32> to vector<1x128xf32>
    %14 = vector.broadcast %13 : vector<1x128xf32> to vector<8x128xf32>
    %c0_9 = arith.constant 0 : index
    %c0_10 = arith.constant 0 : index
    %15 = vector.load %arg5[%c0_9, %c0_10] : memref<8x128xf32, #tpu.memory_space<vmem>>, vector<8x128xf32>
    tpu.vector_store %arg5[%c0_9, %c0_10], %14 {strides = array<i32>} : memref<8x128xf32, #tpu.memory_space<vmem>>, vector<8x128xf32>,
    return
  }
  func.func @transform_0(%arg0: i32) -> (i32, i32) {
    %c0_i32 = arith.constant 0 : i32
    %c0_i32_0 = arith.constant 0 : i32
    return %arg0, %c0_i32 : i32, i32
  }
  func.func @transform_1(%arg0: i32) -> (i32, i32) {
    %c0_i32 = arith.constant 0 : i32
    %c0_i32_0 = arith.constant 0 : i32
    %c0_i32_1 = arith.constant 0 : i32
    return %c0_i32, %c0_i32_0 : i32, i32
  }
  func.func @transform_2(%arg0: i32) -> (i32, i32) {
    %c0_i32 = arith.constant 0 : i32
    %c0_i32_0 = arith.constant 0 : i32
    return %arg0, %c0_i32 : i32, i32
  }
  func.func @transform_3(%arg0: i32) -> (i32, i32) {
    %c0_i32 = arith.constant 0 : i32
    %c0_i32_0 = arith.constant 0 : i32
    return %arg0, %c0_i32 : i32, i32
  }
  func.func @transform_4(%arg0: i32) -> (i32, i32) {
    %c0_i32 = arith.constant 0 : i32
    %c0_i32_0 = arith.constant 0 : i32
    return %arg0, %c0_i32 : i32, i32
  }
}

module attributes {stable_mosaic.version = 11 : i64} {
  func.func @_conv_act_kernel(%arg0: i32, %arg1: memref<8x1024xbf16, #tpu.memory_space<vmem>>, %arg2: memref<1024x128xbf16, #tpu.memory_space<vmem>>, %arg3: memref<1x128xf32, #tpu.memory_space<vmem>>, %arg4: memref<8x128xf32, #tpu.memory_space<vmem>>) attributes {dimension_semantics = [#tpu.dimension_semantics<parallel>], iteration_bounds = array<i64: 1>, scalar_prefetch = 0 : i64, scratch_operands = 0 : i64, tpu.core_type = #tpu.core_type<tc>, window_params = [{transform_indices = @transform_0, window_bounds = array<i64: 8, 1024>}, {pipeline_mode = #tpu.pipeline_mode<synchronous>, transform_indices = @transform_1, window_bounds = array<i64: 1024, 128>}, {pipeline_mode = #tpu.pipeline_mode<synchronous>, transform_indices = @transform_2, window_bounds = array<i64: 1, 128>}, {transform_indices = @transform_3, window_bounds = array<i64: 8, 128>}]} {
    %c0 = arith.constant 0 : index
    %c0_0 = arith.constant 0 : index
    %0 = vector.load %arg1[%c0, %c0_0] : memref<8x1024xbf16, #tpu.memory_space<vmem>>, vector<8x1024xbf16>
    %c0_1 = arith.constant 0 : index
    %c0_2 = arith.constant 0 : index
    %1 = vector.load %arg2[%c0_1, %c0_2] : memref<1024x128xbf16, #tpu.memory_space<vmem>>, vector<1024x128xbf16>
    %cst = arith.constant dense<0.000000e+00> : vector<8x128xf32>
    %2 = tpu.matmul %0, %1, %cst {dimension_numbers = #tpu.dot_dimension_numbers<[1], [0], [0], [1], [0, 0, 1, 1], [], []>} : vector<8x1024xbf16>, vector<1024x128xbf16>, vector<8x128xf32> -> vector<8x128xf32>
    %c0_3 = arith.constant 0 : index
    %c0_4 = arith.constant 0 : index
    %3 = vector.load %arg3[%c0_3, %c0_4] : memref<1x128xf32, #tpu.memory_space<vmem>>, vector<1x128xf32>
    %4 = vector.broadcast %3 : vector<1x128xf32> to vector<8x128xf32>
    %5 = arith.addf %2, %4 : vector<8x128xf32>
    %6 = arith.negf %5 : vector<8x128xf32>
    %7 = math.exp %6 : vector<8x128xf32>
    %cst_5 = arith.constant 1.000000e+00 : f32
    %8 = vector.broadcast %cst_5 : f32 to vector<8x128xf32>
    %9 = arith.addf %8, %7 : vector<8x128xf32>
    %10 = arith.divf %8, %9 : vector<8x128xf32>
    %c0_6 = arith.constant 0 : index
    %c0_7 = arith.constant 0 : index
    %11 = vector.load %arg4[%c0_6, %c0_7] : memref<8x128xf32, #tpu.memory_space<vmem>>, vector<8x128xf32>
    tpu.vector_store %arg4[%c0_6, %c0_7], %10 {strides = array<i32>} : memref<8x128xf32, #tpu.memory_space<vmem>>, vector<8x128xf32>,
    return
  }
  func.func @transform_0(%arg0: i32) -> (i32, i32) {
    %c0_i32 = arith.constant 0 : i32
    %c0_i32_0 = arith.constant 0 : i32
    return %arg0, %c0_i32 : i32, i32
  }
  func.func @transform_1(%arg0: i32) -> (i32, i32) {
    %c0_i32 = arith.constant 0 : i32
    %c0_i32_0 = arith.constant 0 : i32
    %c0_i32_1 = arith.constant 0 : i32
    return %c0_i32, %c0_i32_0 : i32, i32
  }
  func.func @transform_2(%arg0: i32) -> (i32, i32) {
    %c0_i32 = arith.constant 0 : i32
    %c0_i32_0 = arith.constant 0 : i32
    %c0_i32_1 = arith.constant 0 : i32
    return %c0_i32, %c0_i32_0 : i32, i32
  }
  func.func @transform_3(%arg0: i32) -> (i32, i32) {
    %c0_i32 = arith.constant 0 : i32
    %c0_i32_0 = arith.constant 0 : i32
    return %arg0, %c0_i32 : i32, i32
  }
}

</mosaic_0001>

<bundles_post_ra>
// kernel: discriminator_forward.5
= control target key start
LH: loop header
LB: loop body
LE: loop exit
PB: predicated region body
PF: predicated region fallthrough
CT: control target
= control target key end

     0   :  { %s1190_s12 = smov 0   ;;  %s1317_s0 = inlined_call_operand.vmem [shape: bf16[2048,128], index: 0, kind: input, shape index: {}]   ;;  %s1318_s1 = inlined_call_operand.vmem [shape: bf16[128,128], index: 1, kind: input, shape index: {}]   ;;  %s1319_s2 = inlined_call_operand.vmem [shape: f32[1,128], index: 2, kind: input, shape index: {}]   ;;  %s1320_s3 = inlined_call_operand.vmem [shape: bf16[2048,128], index: 3, kind: output, shape index: {}]  }
   0x1 LB: > { %s847_s13 = sadd.s32 4294967295, %s1168_s12   ;;  %p851_p0 = scmp.ge.s32.totalorder %s1168_s12, 1  ;;  %s1168_s12 = sphi %s1190_s12, %s13_s12  }
   0x2   : > { %p138_p1 = scmp.lt.s32.totalorder %s1168_s12, 9 }
   0x4   : > { %p139_p2 = pnand %p851_p0, %p138_p1 }
   0x5   : > { %v1138_v0 = vld [vmem:[%s1318_s1] sm:$0xff] (!%p139_p2)   ;;  %s852_s16 = sshll.u32 (!%p139_p2), %s847_s13, 5  ;;  %v1139_v1 = vld [vmem:[%s1318_s1 + $0x8] sm:$0xff] (!%p139_p2)   ;;  %v1140_v2 = vld [vmem:[%s1318_s1 + $0x10] sm:$0xff] (!%p139_p2)  }
   0x6   : > { %142 = sbr.rel (%p139_p2) target bundleno = 293 (0x125), region = 32  ;;  %p163_p3 = scmp.lt.s32.totalorder (!%p139_p2), %s852_s16, 255  ;;  %1066 = vmatprep.subr.bf16.mxu0 (!%p139_p2), %v1138_v0  ;;  %1114 = vmatprep.subr.bf16.mxu1 (!%p139_p2), %v1138_v0  ;;  %v1141_v3 = vld [vmem:[%s1318_s1 + $0x18] sm:$0xff] (!%p139_p2)   ;;  %v1142_v6 = vld [vmem:[%s1318_s1 + $0x20] sm:$0xff] (!%p139_p2)   ;;  %v1143_v7 = vld [vmem:[%s1318_s1 + $0x28] sm:$0xff] (!%p139_p2)  }
   0x7   : > { %1067 = vmatpush3.bf16.msra.mxu0 (!%p139_p2), %v1138_v0  ;;  %1122 = vmatpush3.bf16.msra.mxu1 (!%p139_p2), %v1138_v0  ;;  %v1144_v8 = vld [vmem:[%s1318_s1 + $0x30] sm:$0xff] (!%p139_p2)   ;;  %v1145_v9 = vld [vmem:[%s1318_s1 + $0x38] sm:$0xff] (!%p139_p2)   ;;  %v1251_v24 = vld [vmem:[%s1319_s2] ss:$0 sm:$0xff] (!%p139_p2) }
   0x8   : > { %1068 = vmatprep.subr.bf16.mxu0 (!%p139_p2), %v1139_v1  ;;  %1115 = vmatprep.subr.bf16.mxu1 (!%p139_p2), %v1139_v1 }
   0xb   : > { %1069 = vmatpush3.bf16.msra.mxu0 (!%p139_p2), %v1139_v1  ;;  %1123 = vmatpush3.bf16.msra.mxu1 (!%p139_p2), %v1139_v1 }
   0xc   : > { %1070 = vmatprep.subr.bf16.mxu0 (!%p139_p2), %v1140_v2  ;;  %1116 = vmatprep.subr.bf16.mxu1 (!%p139_p2), %v1140_v2 }
   0xd   : > { %s1322_s16 = smov (!%p163_p3, %s852_s16), 255 }
   0xe   : > { %s853_s21 = sshll.u32 %s1322_s16, 2 }
   0xf   : > { %s1215_s24 = scalar_lea.vmem %s1317_s0, %s853_s21  ;;  %1071 = vmatpush3.bf16.msra.mxu0 %v1140_v2  ;;  %1124 = vmatpush3.bf16.msra.mxu1 %v1140_v2  ;;  %s1268_s13 = scalar_lea.vmem %s1320_s3, %s853_s21 }
  0x10   : > { %v1146_v4 = vld [vmem:[%s1215_s24] sm:$0xff]   ;;  %1072 = vmatprep.subr.bf16.mxu0 %v1141_v3  ;;  %1117 = vmatprep.subr.bf16.mxu1 %v1141_v3  ;;  %v1148_v10 = vld [vmem:[%s1215_s24 + $0x8] sm:$0xff]   ;;  %v1150_v12 = vld [vmem:[%s1215_s24 + $0x10] sm:$0xff]  }
  0x11   : > { %v1147_v5 = vld [vmem:[%s1215_s24 + $0x40] sm:$0xff]   ;;  %1082 = vmatprep.mubr.bf16.mxu0 %v1146_v4  ;;  %v1149_v11 = vld [vmem:[%s1215_s24 + $0x48] sm:$0xff]   ;;  %v1151_v13 = vld [vmem:[%s1215_s24 + $0x50] sm:$0xff]  }
  0x12   : > { %1098 = vmatprep.mubr.bf16.mxu1 %v1147_v5  ;;  %v1152_v14 = vld [vmem:[%s1215_s24 + $0x18] sm:$0xff]   ;;  %v1154_v16 = vld [vmem:[%s1215_s24 + $0x20] sm:$0xff]   ;;  %v1156_v18 = vld [vmem:[%s1215_s24 + $0x28] sm:$0xff]  }
  0x13   : > { %1073 = vmatpush3.bf16.msra.mxu0 %v1141_v3  ;;  %1125 = vmatpush3.bf16.msra.mxu1 %v1141_v3  ;;  %v1153_v15 = vld [vmem:[%s1215_s24 + $0x58] sm:$0xff]   ;;  %v1155_v17 = vld [vmem:[%s1215_s24 + $0x60] sm:$0xff]   ;;  %v1157_v19 = vld [vmem:[%s1215_s24 + $0x68] sm:$0xff]  }
  0x14   : > { %1074 = vmatprep.subr.bf16.mxu0 %v1142_v6  ;;  %1118 = vmatprep.subr.bf16.mxu1 %v1142_v6  ;;  %v1158_v20 = vld [vmem:[%s1215_s24 + $0x30] sm:$0xff]   ;;  %v1160_v22 = vld [vmem:[%s1215_s24 + $0x38] sm:$0xff]  }
  0x15   : > { %v1159_v21 = vld [vmem:[%s1215_s24 + $0x70] sm:$0xff]   ;;  %v1161_v23 = vld [vmem:[%s1215_s24 + $0x78] sm:$0xff]  }
  0x17   : > { %1075 = vmatpush3.bf16.msra.mxu0 %v1142_v6  ;;  %1126 = vmatpush3.bf16.msra.mxu1 %v1142_v6 }
  0x18   : > { %1076 = vmatprep.subr.bf16.mxu0 %v1143_v7  ;;  %1119 = vmatprep.subr.bf16.mxu1 %v1143_v7 }
  0x1b   : > { %1077 = vmatpush3.bf16.msra.mxu0 %v1143_v7  ;;  %1127 = vmatpush3.bf16.msra.mxu1 %v1143_v7 }
  0x1c   : > { %1078 = vmatprep.subr.bf16.mxu0 %v1144_v8  ;;  %1120 = vmatprep.subr.bf16.mxu1 %v1144_v8 }
  0x1f   : > { %1079 = vmatpush3.bf16.msra.mxu0 %v1144_v8  ;;  %1128 = vmatpush3.bf16.msra.mxu1 %v1144_v8 }
  0x20   : > { %1080 = vmatprep.subr.bf16.mxu0 %v1145_v9  ;;  %1121 = vmatprep.subr.bf16.mxu1 %v1145_v9 }
  0x23   : > { %1081 = vmatpush3.bf16.msra.mxu0 %v1145_v9  ;;  %1129 = vmatpush3.bf16.msra.mxu1 %v1145_v9 }
  0x26   : > { %1083 = vmatmul.mubr.bf16.vlgmr.msra.gmra.mrb[0].mxu0 %v1148_v10  ;;  %1099 = vmatmul.mubr.bf16.vlgmr.msra.gmra.mrb[0].mxu1 %v1149_v11 }
  0x27   : > { %1086 = vmatprep.mubr.bf16.mxu0 %v1150_v12  ;;  %1102 = vmatprep.mubr.bf16.mxu1 %v1151_v13 }
  0x2e   : > { %1087 = vmatmul.mubr.bf16.gmra.mrb[4].mxu0 %v1152_v14  ;;  %1103 = vmatmul.mubr.bf16.gmra.mrb[4].mxu1 %v1153_v15 }
  0x2f   : > { %1090 = vmatprep.mubr.bf16.mxu0 %v1154_v16  ;;  %1106 = vmatprep.mubr.bf16.mxu1 %v1155_v17 }
  0x36   : > { %1091 = vmatmul.mubr.bf16.gmra.mrb[8].mxu0 %v1156_v18  ;;  %1107 = vmatmul.mubr.bf16.gmra.mrb[8].mxu1 %v1157_v19 }
  0x37   : > { %1094 = vmatprep.mubr.bf16.mxu0 %v1158_v20  ;;  %1110 = vmatprep.mubr.bf16.mxu1 %v1159_v21 }
  0x3e   : > { %1095 = vmatmul.mubr.bf16.gmra.mrb[12].mxu0 %v1160_v22  ;;  %1111 = vmatmul.mubr.bf16.gmra.mrb[12].mxu1 %v1161_v23 }
  0xf9   : > { %v1084_v25 = vpop.f32.mrb[0].mxu0  ;;  %v1100_v26 = vpop.f32.mrb[0].mxu1 }
  0xfa   : > { %v417_v27 = vadd.f32 %v1084_v25, %v1251_v24  ;;  %v481_v28 = vadd.f32 %v1100_v26, %v1251_v24  ;;  %v408_v29 = vpop.f32.mrb[1].mxu0  ;;  %v472_v30 = vpop.f32.mrb[1].mxu1 }
  0xfb   : > { %v409_v31 = vadd.f32 %v1251_v24, %v408_v29  ;;  %v473_v32 = vadd.f32 %v1251_v24, %v472_v30  ;;  %v1085_v33 = vpop.f32.mrb[2].mxu0  ;;  %v1101_v34 = vpop.f32.mrb[2].mxu1 }
  0xfc   : > { %vm537_vm0 = vcmp.gt.f32.partialorder %v417_v27, 0.0  ;;  %v569_v35 = vmul.f32 0.2, %v417_v27  ;;  %vm553_vm1 = vcmp.gt.f32.partialorder %v481_v28, 0.0  ;;  %v585_v36 = vmul.f32 0.2, %v481_v28 }
  0xfd   : > { %vm535_vm2 = vcmp.gt.f32.partialorder %v409_v31, 0.0  ;;  %v567_v37 = vmul.f32 0.2, %v409_v31  ;;  %vm551_vm3 = vcmp.gt.f32.partialorder %v473_v32, 0.0  ;;  %v583_v38 = vmul.f32 0.2, %v473_v32 }
  0xfe   : > { %v420_v39 = vadd.f32 %v1085_v33, %v1251_v24  ;;  %v484_v40 = vadd.f32 %v1101_v34, %v1251_v24  ;;  %v411_v41 = vpop.f32.mrb[3].mxu0  ;;  %v475_v42 = vpop.f32.mrb[3].mxu1  ;;  %v601_v43 = vsel %vm537_vm0, %v417_v27, %v569_v35  ;;  %v617_v44 = vsel %vm553_vm1, %v481_v28, %v585_v36 }
  0xff   : > { %v412_v45 = vadd.f32 %v1251_v24, %v411_v41  ;;  %v476_v46 = vadd.f32 %v1251_v24, %v475_v42  ;;  %v599_v51 = vsel %vm535_vm2, %v409_v31, %v567_v37  ;;  %v615_v52 = vsel %vm551_vm3, %v473_v32, %v583_v38 }
 0x100   : > { %vm538_vm4 = vcmp.gt.f32.partialorder %v420_v39, 0.0  ;;  %v570_v47 = vmul.f32 0.2, %v420_v39  ;;  %vm554_vm5 = vcmp.gt.f32.partialorder %v484_v40, 0.0  ;;  %v586_v48 = vmul.f32 0.2, %v484_v40 }
 0x101   : > { %vm536_vm6 = vcmp.gt.f32.partialorder %v412_v45, 0.0  ;;  %v568_v49 = vmul.f32 0.2, %v412_v45  ;;  %vm552_vm7 = vcmp.gt.f32.partialorder %v476_v46, 0.0  ;;  %v584_v50 = vmul.f32 0.2, %v476_v46 }
 0x102   : > { %v602_v53 = vsel %vm538_vm4, %v420_v39, %v570_v47  ;;  %v618_v54 = vsel %vm554_vm5, %v484_v40, %v586_v48  ;;  %v1088_v55 = vpop.f32.mrb[4].mxu0  ;;  %v1104_v56 = vpop.f32.mrb[4].mxu1 }
 0x103   : > { %v955_v57 = vpack.c.bf16 %v602_v53, %v601_v43  ;;  %v995_v58 = vpack.c.bf16 %v618_v54, %v617_v44  ;;  %v600_v59 = vsel %vm536_vm6, %v412_v45, %v568_v49  ;;  %v616_v60 = vsel %vm552_vm7, %v476_v46, %v584_v50  ;;  %v424_v61 = vpop.f32.mrb[5].mxu0  ;;  %v488_v62 = vpop.f32.mrb[5].mxu1 }
 0x104   : > { %v950_v63 = vpack.c.bf16 %v600_v59, %v599_v51  ;;  %v990_v0 = vpack.c.bf16 %v616_v60, %v615_v52  ;;  %v433_v1 = vadd.f32 %v1088_v55, %v1251_v24  ;;  %v497_v2 = vadd.f32 %v1104_v56, %v1251_v24  ;;  %v1089_v3 = vpop.f32.mrb[6].mxu0  ;;  %v1105_v4 = vpop.f32.mrb[6].mxu1 }
 0x105   : > { %1027 = vst [vmem:[%s1268_s13 + $0x8] sm:$0xff] %v955_v57   ;;  %1035 = vst [vmem:[%s1268_s13 + $0x48] sm:$0xff] %v995_v58   ;;  %v425_v5 = vadd.f32 %v1251_v24, %v424_v61  ;;  %v489_v6 = vadd.f32 %v1251_v24, %v488_v62  ;;  %v436_v7 = vadd.f32 %v1089_v3, %v1251_v24  ;;  %v427_v9 = vpop.f32.mrb[7].mxu0  ;;  %v491_v10 = vpop.f32.mrb[7].mxu1 }
 0x106   : > { %v500_v8 = vadd.f32 %v1105_v4, %v1251_v24  ;;  %951 = vst [vmem:[%s1268_s13] sm:$0xff] %v950_v63   ;;  %1034 = vst [vmem:[%s1268_s13 + $0x40] sm:$0xff] %v990_v0   ;;  %vm541_vm8 = vcmp.gt.f32.partialorder %v433_v1, 0.0  ;;  %v573_v11 = vmul.f32 0.2, %v433_v1  ;;  %vm557_vm9 = vcmp.gt.f32.partialorder %v497_v2, 0.0 }
 0x107   : > { %v589_v12 = vmul.f32 0.2, %v497_v2  ;;  %vm539_vm10 = vcmp.gt.f32.partialorder %v425_v5, 0.0  ;;  %v571_v13 = vmul.f32 0.2, %v425_v5  ;;  %vm555_vm11 = vcmp.gt.f32.partialorder %v489_v6, 0.0 }
 0x108   : > { %v605_v14 = vsel %vm541_vm8, %v433_v1, %v573_v11  ;;  %v587_v15 = vmul.f32 0.2, %v489_v6  ;;  %vm542_vm12 = vcmp.gt.f32.partialorder %v436_v7, 0.0  ;;  %v574_v16 = vmul.f32 0.2, %v436_v7 }
 0x109   : > { %v621_v17 = vsel %vm557_vm9, %v497_v2, %v589_v12  ;;  %v603_v18 = vsel %vm539_vm10, %v425_v5, %v571_v13  ;;  %vm558_vm13 = vcmp.gt.f32.partialorder %v500_v8, 0.0  ;;  %v590_v19 = vmul.f32 0.2, %v500_v8  ;;  %v1092_v20 = vpop.f32.mrb[8].mxu0  ;;  %v1108_v21 = vpop.f32.mrb[8].mxu1 }
 0x10a   : > { %v606_v22 = vsel %vm542_vm12, %v436_v7, %v574_v16  ;;  %v428_v23 = vadd.f32 %v1251_v24, %v427_v9  ;;  %v492_v25 = vadd.f32 %v1251_v24, %v491_v10  ;;  %v449_v26 = vadd.f32 %v1092_v20, %v1251_v24  ;;  %v440_v27 = vpop.f32.mrb[9].mxu0  ;;  %v504_v28 = vpop.f32.mrb[9].mxu1 }
 0x10b   : > { %v965_v29 = vpack.c.bf16 %v606_v22, %v605_v14  ;;  %v622_v30 = vsel %vm558_vm13, %v500_v8, %v590_v19  ;;  %v513_v31 = vadd.f32 %v1108_v21, %v1251_v24  ;;  %v441_v32 = vadd.f32 %v1251_v24, %v440_v27  ;;  %v1093_v33 = vpop.f32.mrb[10].mxu0  ;;  %v1109_v34 = vpop.f32.mrb[10].mxu1 }
 0x10c   : > { %v1005_v35 = vpack.c.bf16 %v622_v30, %v621_v17  ;;  %vm540_vm14 = vcmp.gt.f32.partialorder %v428_v23, 0.0  ;;  %v572_v36 = vmul.f32 0.2, %v428_v23  ;;  %vm556_vm15 = vcmp.gt.f32.partialorder %v492_v25, 0.0  ;;  %v443_v37 = vpop.f32.mrb[11].mxu0  ;;  %v507_v38 = vpop.f32.mrb[11].mxu1 }
 0x10d   : > { %1029 = vst [vmem:[%s1268_s13 + $0x18] sm:$0xff] %v965_v29   ;;  %v588_v39 = vmul.f32 0.2, %v492_v25  ;;  %vm545_vm0 = vcmp.gt.f32.partialorder %v449_v26, 0.0  ;;  %v577_v40 = vmul.f32 0.2, %v449_v26  ;;  %v619_v41 = vsel %vm555_vm11, %v489_v6, %v587_v15 }
 0x10e   : > { %vm561_vm1 = vcmp.gt.f32.partialorder %v513_v31, 0.0  ;;  %1037 = vst [vmem:[%s1268_s13 + $0x58] sm:$0xff] %v1005_v35   ;;  %v604_v42 = vsel %vm540_vm14, %v428_v23, %v572_v36  ;;  %v593_v43 = vmul.f32 0.2, %v513_v31  ;;  %vm543_vm2 = vcmp.gt.f32.partialorder %v441_v32, 0.0 }
 0x10f   : > { %v960_v44 = vpack.c.bf16 %v604_v42, %v603_v18  ;;  %v620_v45 = vsel %vm556_vm15, %v492_v25, %v588_v39  ;;  %v575_v46 = vmul.f32 0.2, %v441_v32  ;;  %v505_v47 = vadd.f32 %v1251_v24, %v504_v28 }
 0x110   : > { %v1000_v48 = vpack.c.bf16 %v620_v45, %v619_v41  ;;  %v609_v49 = vsel %vm545_vm0, %v449_v26, %v577_v40  ;;  %v625_v50 = vsel %vm561_vm1, %v513_v31, %v593_v43  ;;  %v452_v51 = vadd.f32 %v1093_v33, %v1251_v24 }
 0x111   : > { %1028 = vst [vmem:[%s1268_s13 + $0x10] sm:$0xff] %v960_v44   ;;  %vm559_vm3 = vcmp.gt.f32.partialorder %v505_v47, 0.0  ;;  %v591_v52 = vmul.f32 0.2, %v505_v47  ;;  %v516_v53 = vadd.f32 %v1109_v34, %v1251_v24  ;;  %v444_v54 = vadd.f32 %v1251_v24, %v443_v37  ;;  %v1096_v55 = vpop.f32.mrb[12].mxu0  ;;  %v1112_v56 = vpop.f32.mrb[12].mxu1 }
 0x112   : > { %1036 = vst [vmem:[%s1268_s13 + $0x50] sm:$0xff] %v1000_v48   ;;  %vm546_vm4 = vcmp.gt.f32.partialorder %v452_v51, 0.0  ;;  %v578_v57 = vmul.f32 0.2, %v452_v51  ;;  %v508_v58 = vadd.f32 %v1251_v24, %v507_v38  ;;  %v465_v59 = vadd.f32 %v1096_v55, %v1251_v24  ;;  %v456_v60 = vpop.f32.mrb[13].mxu0  ;;  %v520_v61 = vpop.f32.mrb[13].mxu1 }
 0x113   : > { %v607_v62 = vsel %vm543_vm2, %v441_v32, %v575_v46  ;;  %vm562_vm5 = vcmp.gt.f32.partialorder %v516_v53, 0.0  ;;  %v594_v63 = vmul.f32 0.2, %v516_v53  ;;  %vm544_vm6 = vcmp.gt.f32.partialorder %v444_v54, 0.0  ;;  %v1097_v0 = vpop.f32.mrb[14].mxu0  ;;  %v1113_v1 = vpop.f32.mrb[14].mxu1 }
 0x114   : > { %v610_v2 = vsel %vm546_vm4, %v452_v51, %v578_v57  ;;  %v576_v3 = vmul.f32 0.2, %v444_v54  ;;  %vm560_vm7 = vcmp.gt.f32.partialorder %v508_v58, 0.0  ;;  %v592_v4 = vmul.f32 0.2, %v508_v58  ;;  %v459_v5 = vpop.f32.mrb[15].mxu0 }
 0x115   : > { %v623_v6 = vsel %vm559_vm3, %v505_v47, %v591_v52  ;;  %v975_v7 = vpack.c.bf16 %v610_v2, %v609_v49  ;;  %v626_v8 = vsel %vm562_vm5, %v516_v53, %v594_v63  ;;  %v581_v9 = vmul.f32 0.2, %v465_v59  ;;  %v523_v10 = vpop.f32.mrb[15].mxu1 }
 0x116   : > { %v1015_v11 = vpack.c.bf16 %v626_v8, %v625_v50  ;;  %v608_v12 = vsel %vm544_vm6, %v444_v54, %v576_v3  ;;  %v624_v13 = vsel %vm560_vm7, %v508_v58, %v592_v4  ;;  %v529_v14 = vadd.f32 %v1112_v56, %v1251_v24 }
 0x117   : > { %1031 = vst [vmem:[%s1268_s13 + $0x28] sm:$0xff] %v975_v7   ;;  %v970_v15 = vpack.c.bf16 %v608_v12, %v607_v62  ;;  %v1010_v16 = vpack.c.bf16 %v624_v13, %v623_v6  ;;  %vm549_vm8 = vcmp.gt.f32.partialorder %v465_v59, 0.0  ;;  %v457_v17 = vadd.f32 %v1251_v24, %v456_v60 }
 0x118   : > { %1039 = vst [vmem:[%s1268_s13 + $0x68] sm:$0xff] %v1015_v11   ;;  %vm565_vm9 = vcmp.gt.f32.partialorder %v529_v14, 0.0  ;;  %v597_v18 = vmul.f32 0.2, %v529_v14  ;;  %v521_v19 = vadd.f32 %v1251_v24, %v520_v61  ;;  %v468_v20 = vadd.f32 %v1097_v0, %v1251_v24 }
 0x119   : > { %1030 = vst [vmem:[%s1268_s13 + $0x20] sm:$0xff] %v970_v15   ;;  %1038 = vst [vmem:[%s1268_s13 + $0x60] sm:$0xff] %v1010_v16   ;;  %v579_v21 = vmul.f32 0.2, %v457_v17  ;;  %v532_v22 = vadd.f32 %v1113_v1, %v1251_v24  ;;  %v460_v23 = vadd.f32 %v1251_v24, %v459_v5  ;;  %v613_v25 = vsel %vm549_vm8, %v465_v59, %v581_v9 }
 0x11a   : > { %vm547_vm10 = vcmp.gt.f32.partialorder %v457_v17, 0.0  ;;  %vm550_vm11 = vcmp.gt.f32.partialorder %v468_v20, 0.0  ;;  %v629_v26 = vsel %vm565_vm9, %v529_v14, %v597_v18  ;;  %v582_v27 = vmul.f32 0.2, %v468_v20 }
 0x11b   : > { %vm566_vm12 = vcmp.gt.f32.partialorder %v532_v22, 0.0  ;;  %v598_v28 = vmul.f32 0.2, %v532_v22  ;;  %vm563_vm13 = vcmp.gt.f32.partialorder %v521_v19, 0.0  ;;  %vm548_vm14 = vcmp.gt.f32.partialorder %v460_v23, 0.0 }
 0x11c   : > { %v580_v29 = vmul.f32 0.2, %v460_v23  ;;  %v524_v30 = vadd.f32 %v1251_v24, %v523_v10  ;;  %v611_v31 = vsel %vm547_vm10, %v457_v17, %v579_v21  ;;  %v595_v32 = vmul.f32 0.2, %v521_v19 }
 0x11d   : > { %v614_v33 = vsel %vm550_vm11, %v468_v20, %v582_v27  ;;  %v630_v34 = vsel %vm566_vm12, %v532_v22, %v598_v28 }
 0x11e   : > { %v985_v35 = vpack.c.bf16 %v614_v33, %v613_v25  ;;  %v1025_v36 = vpack.c.bf16 %v630_v34, %v629_v26  ;;  %v612_v37 = vsel %vm548_vm14, %v460_v23, %v580_v29  ;;  %vm564_vm15 = vcmp.gt.f32.partialorder %v524_v30, 0.0 }
 0x11f   : > { %v980_v38 = vpack.c.bf16 %v612_v37, %v611_v31  ;;  %v596_v39 = vmul.f32 0.2, %v524_v30  ;;  %v627_v40 = vsel %vm563_vm13, %v521_v19, %v595_v32 }
 0x120   : > { %1033 = vst [vmem:[%s1268_s13 + $0x38] sm:$0xff] %v985_v35   ;;  %1041 = vst [vmem:[%s1268_s13 + $0x78] sm:$0xff] %v1025_v36  }
 0x121   : > { %1032 = vst [vmem:[%s1268_s13 + $0x30] sm:$0xff] %v980_v38   ;;  %v628_v41 = vsel %vm564_vm15, %v524_v30, %v596_v39 }
 0x122   : > { %v1020_v42 = vpack.c.bf16 %v628_v41, %v627_v40 }
 0x124   : > { %1040 = vst [vmem:[%s1268_s13 + $0x70] sm:$0xff] %v1020_v42  }
 0x125 PF: > { %s13_s12 = sadd.s32 1, %s1168_s12  }
 0x126   : > { %p10_p4 = scmp.ge.s32.totalorder %s13_s12, 10  }
 0x128   :  { %12 = sbr.rel (!%p10_p4) target bundleno = 1 (0x1), region = 62 }

// kernel: discriminator_forward.6
= control target key start
LH: loop header
LB: loop body
LE: loop exit
PB: predicated region body
PF: predicated region fallthrough
CT: control target
= control target key end

     0   :  { %s1311_s15 = smov 0   ;;  %s1490_s0 = inlined_call_operand.vmem [shape: bf16[512,128], index: 0, kind: input, shape index: {}]   ;;  %s1491_s1 = inlined_call_operand.vmem [shape: bf16[128,128], index: 1, kind: input, shape index: {}]   ;;  %s1492_s2 = inlined_call_operand.vmem [shape: bf16[512,128], index: 2, kind: output, shape index: {0}]   ;;  %s1493_s3 = inlined_call_operand.vmem [shape: f32[16,128], index: 3, kind: output, shape index: {1}]   ;;  %s1494_s4 = inlined_call_operand.vmem [shape: f32[16,128], index: 4, kind: output, shape index: {2}]  }
   0x1 LB: > { %s1317_s16 = sadd.s32 4294967295, %s1284_s15   ;;  %p966_p0 = scmp.ge.s32.totalorder %s1284_s15, 1  ;;  %s1284_s15 = sphi %s1311_s15, %s15_s15  }
   0x2   : > { %p168_p1 = scmp.lt.s32.totalorder %s1284_s15, 3 }
   0x4   : > { %p169_p2 = pnand %p966_p0, %p168_p1 }
   0x5   : > { %v1254_v0 = vld [vmem:[%s1491_s1] sm:$0xff] (!%p169_p2)   ;;  %s967_s19 = sshll.u32 (!%p169_p2), %s1317_s16, 5  ;;  %v1255_v1 = vld [vmem:[%s1491_s1 + $0x8] sm:$0xff] (!%p169_p2)   ;;  %v1256_v2 = vld [vmem:[%s1491_s1 + $0x10] sm:$0xff] (!%p169_p2)   ;;  %p214_p4 = scmp.lt.s32.totalorder (!%p169_p2), %s1317_s16, 1 }
   0x6   : > { %172 = sbr.rel (%p169_p2) target bundleno = 330 (0x14a), region = 28  ;;  %p203_p3 = scmp.lt.s32.totalorder (!%p169_p2), %s967_s19, 63  ;;  %1182 = vmatprep.subr.bf16.mxu0 (!%p169_p2), %v1254_v0  ;;  %1230 = vmatprep.subr.bf16.mxu1 (!%p169_p2), %v1254_v0  ;;  %v1257_v3 = vld [vmem:[%s1491_s1 + $0x18] sm:$0xff] (!%p169_p2)   ;;  %v1258_v5 = vld [vmem:[%s1491_s1 + $0x20] sm:$0xff] (!%p169_p2)   ;;  %v1259_v6 = vld [vmem:[%s1491_s1 + $0x28] sm:$0xff] (!%p169_p2)  }
   0x7   : > { %1183 = vmatpush3.bf16.msra.mxu0 (!%p169_p2), %v1254_v0  ;;  %1238 = vmatpush3.bf16.msra.mxu1 (!%p169_p2), %v1254_v0  ;;  %v1260_v8 = vld [vmem:[%s1491_s1 + $0x30] sm:$0xff] (!%p169_p2)   ;;  %v1261_v9 = vld [vmem:[%s1491_s1 + $0x38] sm:$0xff] (!%p169_p2)  }
   0x8   : > { %1184 = vmatprep.subr.bf16.mxu0 (!%p169_p2), %v1255_v1  ;;  %1231 = vmatprep.subr.bf16.mxu1 (!%p169_p2), %v1255_v1 }
   0xb   : > { %1185 = vmatpush3.bf16.msra.mxu0 (!%p169_p2), %v1255_v1  ;;  %1239 = vmatpush3.bf16.msra.mxu1 (!%p169_p2), %v1255_v1 }
   0xc   : > { %1186 = vmatprep.subr.bf16.mxu0 (!%p169_p2), %v1256_v2  ;;  %1232 = vmatprep.subr.bf16.mxu1 (!%p169_p2), %v1256_v2 }
   0xd   : > { %s1496_s19 = smov (!%p203_p3, %s967_s19), 63  ;;  %s1498_s16 = smov (!%p214_p4, %s1317_s16), 1 }
   0xe   : > { %s968_s24 = sshll.u32 %s1496_s19, 2  ;;  %s971_s17 = sshll.u32 %s1498_s16, 3 }
   0xf   : > { %s1339_s27 = scalar_lea.vmem %s1490_s0, %s968_s24  ;;  %1187 = vmatpush3.bf16.msra.mxu0 %v1256_v2  ;;  %1240 = vmatpush3.bf16.msra.mxu1 %v1256_v2  ;;  %s1381_s14 = scalar_lea.vmem %s1492_s2, %s968_s24 }
  0x10   : > { %v1262_v4 = vld [vmem:[%s1339_s27] sm:$0xff]   ;;  %1188 = vmatprep.subr.bf16.mxu0 %v1257_v3  ;;  %1233 = vmatprep.subr.bf16.mxu1 %v1257_v3  ;;  %v1263_v10 = vld [vmem:[%s1339_s27 + $0x8] sm:$0xff]   ;;  %v1264_v12 = vld [vmem:[%s1339_s27 + $0x10] sm:$0xff]   ;;  %s217_s20 = scalar_lea.vmem %s1493_s3, %s971_s17  ;;  %s221_s23 = scalar_lea.vmem %s1494_s4, %s971_s17 }
  0x11   : > { %1198 = vmatprep.mubr.bf16.mxu0 %v1262_v4  ;;  %v1270_v7 = vld [vmem:[%s1339_s27 + $0x40] sm:$0xff]   ;;  %v1271_v11 = vld [vmem:[%s1339_s27 + $0x48] sm:$0xff]   ;;  %v1272_v13 = vld [vmem:[%s1339_s27 + $0x50] sm:$0xff]  }
  0x12   : > { %1214 = vmatprep.mubr.bf16.mxu1 %v1270_v7  ;;  %v1265_v14 = vld [vmem:[%s1339_s27 + $0x18] sm:$0xff]   ;;  %v1266_v16 = vld [vmem:[%s1339_s27 + $0x20] sm:$0xff]   ;;  %v1267_v18 = vld [vmem:[%s1339_s27 + $0x28] sm:$0xff]  }
  0x13   : > { %1189 = vmatpush3.bf16.msra.mxu0 %v1257_v3  ;;  %1241 = vmatpush3.bf16.msra.mxu1 %v1257_v3  ;;  %v1273_v15 = vld [vmem:[%s1339_s27 + $0x58] sm:$0xff]   ;;  %v1274_v17 = vld [vmem:[%s1339_s27 + $0x60] sm:$0xff]   ;;  %v1275_v19 = vld [vmem:[%s1339_s27 + $0x68] sm:$0xff]  }
  0x14   : > { %1190 = vmatprep.subr.bf16.mxu0 %v1258_v5  ;;  %1234 = vmatprep.subr.bf16.mxu1 %v1258_v5  ;;  %v1268_v20 = vld [vmem:[%s1339_s27 + $0x30] sm:$0xff]   ;;  %v1269_v22 = vld [vmem:[%s1339_s27 + $0x38] sm:$0xff]  }
  0x15   : > { %v1276_v21 = vld [vmem:[%s1339_s27 + $0x70] sm:$0xff]   ;;  %v1277_v23 = vld [vmem:[%s1339_s27 + $0x78] sm:$0xff]  }
  0x17   : > { %1191 = vmatpush3.bf16.msra.mxu0 %v1258_v5  ;;  %1242 = vmatpush3.bf16.msra.mxu1 %v1258_v5 }
  0x18   : > { %1192 = vmatprep.subr.bf16.mxu0 %v1259_v6  ;;  %1235 = vmatprep.subr.bf16.mxu1 %v1259_v6 }
  0x1b   : > { %1193 = vmatpush3.bf16.msra.mxu0 %v1259_v6  ;;  %1243 = vmatpush3.bf16.msra.mxu1 %v1259_v6 }
  0x1c   : > { %1194 = vmatprep.subr.bf16.mxu0 %v1260_v8  ;;  %1236 = vmatprep.subr.bf16.mxu1 %v1260_v8 }
  0x1f   : > { %1195 = vmatpush3.bf16.msra.mxu0 %v1260_v8  ;;  %1244 = vmatpush3.bf16.msra.mxu1 %v1260_v8 }
  0x20   : > { %1196 = vmatprep.subr.bf16.mxu0 %v1261_v9  ;;  %1237 = vmatprep.subr.bf16.mxu1 %v1261_v9 }
  0x23   : > { %1197 = vmatpush3.bf16.msra.mxu0 %v1261_v9  ;;  %1245 = vmatpush3.bf16.msra.mxu1 %v1261_v9 }
  0x26   : > { %1199 = vmatmul.mubr.bf16.vlgmr.msra.gmra.mrb[0].mxu0 %v1263_v10  ;;  %1215 = vmatmul.mubr.bf16.vlgmr.msra.gmra.mrb[0].mxu1 %v1271_v11 }
  0x27   : > { %1202 = vmatprep.mubr.bf16.mxu0 %v1264_v12  ;;  %1218 = vmatprep.mubr.bf16.mxu1 %v1272_v13 }
  0x2e   : > { %1203 = vmatmul.mubr.bf16.gmra.mrb[4].mxu0 %v1265_v14  ;;  %1219 = vmatmul.mubr.bf16.gmra.mrb[4].mxu1 %v1273_v15 }
  0x2f   : > { %1206 = vmatprep.mubr.bf16.mxu0 %v1266_v16  ;;  %1222 = vmatprep.mubr.bf16.mxu1 %v1274_v17 }
  0x36   : > { %1207 = vmatmul.mubr.bf16.gmra.mrb[8].mxu0 %v1267_v18  ;;  %1223 = vmatmul.mubr.bf16.gmra.mrb[8].mxu1 %v1275_v19 }
  0x37   : > { %1210 = vmatprep.mubr.bf16.mxu0 %v1268_v20  ;;  %1226 = vmatprep.mubr.bf16.mxu1 %v1276_v21 }
  0x3e   : > { %1211 = vmatmul.mubr.bf16.gmra.mrb[12].mxu0 %v1269_v22  ;;  %1227 = vmatmul.mubr.bf16.gmra.mrb[12].mxu1 %v1277_v23 }
  0xf9   : > { %v1200_v24 = vpop.f32.mrb[0].mxu0  ;;  %v1372_v25 = vpop.f32.mrb[0].mxu1 }
  0xfa   : > { %v449_v26 = vpop.f32.mrb[1].mxu0  ;;  %v1374_v27 = vpop.f32.mrb[1].mxu1  ;;  %v775_v39 = vmul.f32 %v1200_v24, %v1200_v24 }
  0xfb   : > { %v1201_v28 = vpop.f32.mrb[2].mxu0  ;;  %v1383_v29 = vpop.f32.mrb[2].mxu1  ;;  %v773_v30 = vmul.f32 %v449_v26, %v449_v26 }
  0xfc   : > { %v1071_v31 = vpack.c.bf16 %v1201_v28, %v1200_v24  ;;  %v452_v32 = vpop.f32.mrb[3].mxu0  ;;  %v1111_v33 = vpack.c.bf16 %v1383_v29, %v1372_v25  ;;  %v1387_v34 = vpop.f32.mrb[3].mxu1  ;;  %v776_v42 = vmul.f32 %v1201_v28, %v1201_v28 }
  0xfd   : > { %v1066_v35 = vpack.c.bf16 %v452_v32, %v449_v26  ;;  %v736_v36 = vadd.f32 %v452_v32, %v449_v26  ;;  %v774_v37 = vmul.f32 %v452_v32, %v452_v32  ;;  %v1106_v38 = vpack.c.bf16 %v1387_v34, %v1374_v27 }
  0xfe   : > { %1143 = vst [vmem:[%s1381_s14 + $0x8] sm:$0xff] %v1071_v31   ;;  %1151 = vst [vmem:[%s1381_s14 + $0x48] sm:$0xff] %v1111_v33  }
  0xff   : > { %1067 = vst [vmem:[%s1381_s14] sm:$0xff] %v1066_v35   ;;  %v737_v40 = vadd.f32 %v1200_v24, %v736_v36  ;;  %v805_v41 = vadd.f32 %v774_v37, %v773_v30  ;;  %1150 = vst [vmem:[%s1381_s14 + $0x40] sm:$0xff] %v1106_v38  }
 0x101   : > { %v806_v43 = vadd.f32 %v805_v41, %v775_v39  ;;  %v1204_v44 = vpop.f32.mrb[4].mxu0  ;;  %v738_v45 = vadd.f32 %v1201_v28, %v737_v40  ;;  %v1395_v46 = vpop.f32.mrb[4].mxu1 }
 0x102   : > { %v465_v47 = vpop.f32.mrb[5].mxu0  ;;  %v1397_v48 = vpop.f32.mrb[5].mxu1  ;;  %v779_v63 = vmul.f32 %v1204_v44, %v1204_v44 }
 0x103   : > { %v739_v49 = vadd.f32 %v738_v45, %v465_v47  ;;  %v777_v50 = vmul.f32 %v465_v47, %v465_v47  ;;  %v807_v51 = vadd.f32 %v806_v43, %v776_v42  ;;  %v1205_v52 = vpop.f32.mrb[6].mxu0  ;;  %v1399_v53 = vpop.f32.mrb[6].mxu1 }
 0x104   : > { %v1081_v54 = vpack.c.bf16 %v1205_v52, %v1204_v44  ;;  %v468_v55 = vpop.f32.mrb[7].mxu0  ;;  %v1121_v56 = vpack.c.bf16 %v1399_v53, %v1395_v46  ;;  %v1403_v57 = vpop.f32.mrb[7].mxu1  ;;  %v780_v2 = vmul.f32 %v1205_v52, %v1205_v52 }
 0x105   : > { %v808_v58 = vadd.f32 %v807_v51, %v777_v50  ;;  %v1076_v59 = vpack.c.bf16 %v468_v55, %v465_v47  ;;  %v740_v60 = vadd.f32 %v739_v49, %v468_v55  ;;  %v778_v61 = vmul.f32 %v468_v55, %v468_v55 }
 0x106   : > { %1145 = vst [vmem:[%s1381_s14 + $0x18] sm:$0xff] %v1081_v54   ;;  %1153 = vst [vmem:[%s1381_s14 + $0x58] sm:$0xff] %v1121_v56   ;;  %v1116_v62 = vpack.c.bf16 %v1403_v57, %v1397_v48 }
 0x107   : > { %1144 = vst [vmem:[%s1381_s14 + $0x10] sm:$0xff] %v1076_v59   ;;  %v741_v0 = vadd.f32 %v1204_v44, %v740_v60  ;;  %v809_v1 = vadd.f32 %v808_v58, %v778_v61  ;;  %v789_v61 = vmul.f32 %v1374_v27, %v1374_v27 }
 0x108   : > { %1152 = vst [vmem:[%s1381_s14 + $0x50] sm:$0xff] %v1116_v62  }
 0x109   : > { %v810_v3 = vadd.f32 %v809_v1, %v779_v63  ;;  %v1208_v4 = vpop.f32.mrb[8].mxu0  ;;  %v742_v5 = vadd.f32 %v1205_v52, %v741_v0  ;;  %v1411_v6 = vpop.f32.mrb[8].mxu1 }
 0x10a   : > { %v481_v7 = vpop.f32.mrb[9].mxu0  ;;  %v1413_v8 = vpop.f32.mrb[9].mxu1  ;;  %v783_v23 = vmul.f32 %v1208_v4, %v1208_v4 }
 0x10b   : > { %v743_v9 = vadd.f32 %v742_v5, %v481_v7  ;;  %v781_v10 = vmul.f32 %v481_v7, %v481_v7  ;;  %v811_v11 = vadd.f32 %v810_v3, %v780_v2  ;;  %v1209_v12 = vpop.f32.mrb[10].mxu0  ;;  %v1415_v13 = vpop.f32.mrb[10].mxu1  ;;  %v790_v2 = vmul.f32 %v1387_v34, %v1387_v34 }
 0x10c   : > { %v1091_v14 = vpack.c.bf16 %v1209_v12, %v1208_v4  ;;  %v484_v15 = vpop.f32.mrb[11].mxu0  ;;  %v1131_v16 = vpack.c.bf16 %v1415_v13, %v1411_v6  ;;  %v1419_v17 = vpop.f32.mrb[11].mxu1  ;;  %v784_v28 = vmul.f32 %v1209_v12, %v1209_v12  ;;  %v791_v3 = vmul.f32 %v1372_v25, %v1372_v25 }
 0x10d   : > { %v812_v18 = vadd.f32 %v811_v11, %v781_v10  ;;  %v1086_v19 = vpack.c.bf16 %v484_v15, %v481_v7  ;;  %v744_v20 = vadd.f32 %v743_v9, %v484_v15  ;;  %v782_v21 = vmul.f32 %v484_v15, %v484_v15 }
 0x10e   : > { %1147 = vst [vmem:[%s1381_s14 + $0x28] sm:$0xff] %v1091_v14   ;;  %1155 = vst [vmem:[%s1381_s14 + $0x68] sm:$0xff] %v1131_v16   ;;  %v1126_v22 = vpack.c.bf16 %v1419_v17, %v1413_v8  ;;  %v792_v7 = vmul.f32 %v1383_v29, %v1383_v29  ;;  %v794_v15 = vmul.f32 %v1403_v57, %v1403_v57 }
 0x10f   : > { %1146 = vst [vmem:[%s1381_s14 + $0x20] sm:$0xff] %v1086_v19   ;;  %v745_v24 = vadd.f32 %v1208_v4, %v744_v20  ;;  %v813_v26 = vadd.f32 %v812_v18, %v782_v21 }
 0x110   : > { %1154 = vst [vmem:[%s1381_s14 + $0x60] sm:$0xff] %v1126_v22  }
 0x111   : > { %v814_v30 = vadd.f32 %v813_v26, %v783_v23  ;;  %v1212_v31 = vpop.f32.mrb[12].mxu0  ;;  %v746_v32 = vadd.f32 %v1209_v12, %v745_v24  ;;  %v1427_v33 = vpop.f32.mrb[12].mxu1  ;;  %v798_v24 = vmul.f32 %v1419_v17, %v1419_v17 }
 0x112   : > { %v497_v35 = vpop.f32.mrb[13].mxu0  ;;  %v561_v36 = vpop.f32.mrb[13].mxu1  ;;  %v787_v54 = vmul.f32 %v1212_v31, %v1212_v31 }
 0x113   : > { %v747_v37 = vadd.f32 %v746_v32, %v497_v35  ;;  %v785_v38 = vmul.f32 %v497_v35, %v497_v35  ;;  %v815_v39 = vadd.f32 %v814_v30, %v784_v28  ;;  %v1213_v40 = vpop.f32.mrb[14].mxu0  ;;  %v1429_v41 = vpop.f32.mrb[14].mxu1 }
 0x114   : > { %v1101_v42 = vpack.c.bf16 %v1213_v40, %v1212_v31  ;;  %v500_v43 = vpop.f32.mrb[15].mxu0  ;;  %v1141_v44 = vpack.c.bf16 %v1429_v41, %v1427_v33  ;;  %v564_v45 = vpop.f32.mrb[15].mxu1  ;;  %v788_v58 = vmul.f32 %v1213_v40, %v1213_v40 }
 0x115   : > { %v816_v47 = vadd.f32 %v815_v39, %v785_v38  ;;  %v1096_v49 = vpack.c.bf16 %v500_v43, %v497_v35  ;;  %v748_v50 = vadd.f32 %v747_v37, %v500_v43  ;;  %v786_v51 = vmul.f32 %v500_v43, %v500_v43 }
 0x116   : > { %1149 = vst [vmem:[%s1381_s14 + $0x38] sm:$0xff] %v1101_v42   ;;  %1157 = vst [vmem:[%s1381_s14 + $0x78] sm:$0xff] %v1141_v44   ;;  %v1136_v52 = vpack.c.bf16 %v564_v45, %v561_v36  ;;  %v803_v39 = vmul.f32 %v1427_v33, %v1427_v33  ;;  %v804_v42 = vmul.f32 %v1429_v41, %v1429_v41 }
 0x117   : > { %1148 = vst [vmem:[%s1381_s14 + $0x30] sm:$0xff] %v1096_v49   ;;  %v749_v55 = vadd.f32 %v1212_v31, %v748_v50  ;;  %v817_v56 = vadd.f32 %v816_v47, %v786_v51  ;;  %v801_v31 = vmul.f32 %v561_v36, %v561_v36 }
 0x118   : > { %1156 = vst [vmem:[%s1381_s14 + $0x70] sm:$0xff] %v1136_v52  }
 0x119   : > { %v818_v59 = vadd.f32 %v817_v56, %v787_v54  ;;  %v750_v60 = vadd.f32 %v1213_v40, %v749_v55 }
 0x11b   : > { %v751_v62 = vadd.f32 %v750_v60, %v1374_v27  ;;  %v819_v63 = vadd.f32 %v818_v59, %v788_v58  ;;  %v793_v27 = vmul.f32 %v1397_v48, %v1397_v48 }
 0x11d   : > { %v820_v0 = vadd.f32 %v819_v63, %v789_v61  ;;  %v752_v1 = vadd.f32 %v751_v62, %v1387_v34 }
 0x11f   : > { %v753_v4 = vadd.f32 %v1372_v25, %v752_v1  ;;  %v821_v5 = vadd.f32 %v820_v0, %v790_v2  ;;  %v795_v25 = vmul.f32 %v1395_v46, %v1395_v46 }
 0x121   : > { %v822_v9 = vadd.f32 %v821_v5, %v791_v3  ;;  %v754_v10 = vadd.f32 %v1383_v29, %v753_v4  ;;  %v796_v29 = vmul.f32 %v1399_v53, %v1399_v53 }
 0x123   : > { %v755_v11 = vadd.f32 %v754_v10, %v1397_v48  ;;  %v823_v12 = vadd.f32 %v822_v9, %v792_v7  ;;  %v797_v48 = vmul.f32 %v1413_v8, %v1413_v8 }
 0x125   : > { %v824_v14 = vadd.f32 %v823_v12, %v793_v27  ;;  %v756_v34 = vadd.f32 %v755_v11, %v1403_v57 }
 0x127   : > { %v757_v16 = vadd.f32 %v1395_v46, %v756_v34  ;;  %v825_v18 = vadd.f32 %v824_v14, %v794_v15  ;;  %v799_v46 = vmul.f32 %v1411_v6, %v1411_v6 }
 0x129   : > { %v826_v19 = vadd.f32 %v825_v18, %v795_v25  ;;  %v758_v20 = vadd.f32 %v1399_v53, %v757_v16  ;;  %v800_v53 = vmul.f32 %v1415_v13, %v1415_v13 }
 0x12b   : > { %v759_v21 = vadd.f32 %v758_v20, %v1413_v8  ;;  %v827_v22 = vadd.f32 %v826_v19, %v796_v29 }
 0x12d   : > { %v828_v23 = vadd.f32 %v827_v22, %v797_v48  ;;  %v760_v57 = vadd.f32 %v759_v21, %v1419_v17  ;;  %v802_v17 = vmul.f32 %v564_v45, %v564_v45 }
 0x12f   : > { %v761_v26 = vadd.f32 %v1411_v6, %v760_v57  ;;  %v829_v28 = vadd.f32 %v828_v23, %v798_v24 }
 0x131   : > { %v830_v30 = vadd.f32 %v829_v28, %v799_v46  ;;  %v762_v8 = vadd.f32 %v1415_v13, %v761_v26 }
 0x133   : > { %v763_v32 = vadd.f32 %v762_v8, %v561_v36  ;;  %v831_v35 = vadd.f32 %v830_v30, %v800_v53 }
 0x135   : > { %v832_v37 = vadd.f32 %v831_v35, %v801_v31  ;;  %v764_v38 = vadd.f32 %v763_v32, %v564_v45 }
 0x137   : > { %v765_v40 = vadd.f32 %v1427_v33, %v764_v38  ;;  %v833_v6 = vadd.f32 %v832_v37, %v802_v17 }
 0x139   : > { %v766_v43 = vadd.f32 %v1429_v41, %v765_v40  ;;  %v834_v13 = vadd.f32 %v833_v6, %v803_v39 }
 0x13b   : > { %v767_v44 = vrot.slane %v766_v43, 4  ;;  %v835_v47 = vadd.f32 %v834_v13, %v804_v42 }
 0x13d   : > { %v768_v36 = vadd.f32 %v767_v44, %v766_v43  ;;  %v836_v49 = vrot.slane %v835_v47, 4 }
 0x13f   : > { %v769_v50 = vrot.slane %v768_v36, 2  ;;  %v837_v45 = vadd.f32 %v836_v49, %v835_v47 }
 0x141   : > { %v770_v51 = vadd.f32 %v769_v50, %v768_v36  ;;  %v838_v52 = vrot.slane %v837_v45, 2 }
 0x143   : > { %v771_v54 = vrot.slane %v770_v51, 1  ;;  %v839_v33 = vadd.f32 %v838_v52, %v837_v45 }
 0x145   : > { %v772_v55 = vadd.f32 %v771_v54, %v770_v51  ;;  %v840_v56 = vrot.slane %v839_v33, 1 }
 0x147   : > { %v841_v41 = vadd.f32 %v840_v56, %v839_v33  ;;  %842 = vst [vmem:[%s217_s20] sm:$0xff] %v772_v55 }
 0x149   : > { %843 = vst [vmem:[%s221_s23] sm:$0xff] %v841_v41 }
 0x14a PF: > { %s15_s15 = sadd.s32 1, %s1284_s15  }
 0x14b   : > { %p12_p5 = scmp.ge.s32.totalorder %s15_s15, 4  }
 0x14d   :  { %14 = sbr.rel (!%p12_p5) target bundleno = 1 (0x1), region = 82 }

// kernel: discriminator_forward.7
= control target key start
LH: loop header
LB: loop body
LE: loop exit
PB: predicated region body
PF: predicated region fallthrough
CT: control target
= control target key end

     0   :  { %s888_s1 = inlined_call_operand.vmem [shape: bf16[256,128], index: 1, kind: input, shape index: {}]   ;;  %s889_s0 = inlined_call_operand.vmem [shape: bf16[128,256], index: 0, kind: input, shape index: {}]   ;;  %s890_s2 = inlined_call_operand.vmem [shape: bf16[128,128], index: 2, kind: output, shape index: {0}]   ;;  %s891_s3 = inlined_call_operand.vmem [shape: f32[8,128], index: 3, kind: output, shape index: {1}]   ;;  %s892_s4 = inlined_call_operand.vmem [shape: f32[8,128], index: 4, kind: output, shape index: {2}]  }
   0x1   :  { %v679_v0 = vld [vmem:[%s888_s1 + $0x40] sm:$0xff]   ;;  %v681_v2 = vld [vmem:[%s888_s1 + $0x48] sm:$0xff]   ;;  %v683_v4 = vld [vmem:[%s888_s1 + $0x50] sm:$0xff]  }
   0x2   :  { %v680_v1 = vld [vmem:[%s888_s1] sm:$0xff]   ;;  %599 = vmatprep.subr.bf16.mxu0 %v679_v0  ;;  %663 = vmatprep.subr.bf16.mxu1 %v679_v0  ;;  %v682_v3 = vld [vmem:[%s888_s1 + $0x8] sm:$0xff]   ;;  %v684_v5 = vld [vmem:[%s888_s1 + $0x10] sm:$0xff]  }
   0x3   :  { %600 = vmatpush3.bf16.msra.mxu0 %v680_v1  ;;  %671 = vmatpush3.bf16.msra.mxu1 %v680_v1  ;;  %v685_v6 = vld [vmem:[%s888_s1 + $0x58] sm:$0xff]   ;;  %v687_v8 = vld [vmem:[%s888_s1 + $0x60] sm:$0xff]   ;;  %v689_v10 = vld [vmem:[%s888_s1 + $0x68] sm:$0xff]  }
   0x4   :  { %601 = vmatprep.subr.bf16.mxu0 %v681_v2  ;;  %664 = vmatprep.subr.bf16.mxu1 %v681_v2  ;;  %v686_v7 = vld [vmem:[%s888_s1 + $0x18] sm:$0xff]   ;;  %v688_v9 = vld [vmem:[%s888_s1 + $0x20] sm:$0xff]   ;;  %v690_v12 = vld [vmem:[%s888_s1 + $0x28] sm:$0xff]  }
   0x5   :  { %v697_v11 = vld [vmem:[%s889_s0 + $0x4] ss:$8 sps:$4 sm:$0xff]   ;;  %v691_v14 = vld [vmem:[%s888_s1 + $0x70] sm:$0xff]   ;;  %v693_v16 = vld [vmem:[%s888_s1 + $0x78] sm:$0xff]  }
   0x6   :  { %v703_v13 = vld [vmem:[%s889_s0 + $0x44] ss:$8 sps:$4 sm:$0xff]   ;;  %271 = vmatprep.mubr.bf16.mxu0 %v697_v11  ;;  %v692_v15 = vld [vmem:[%s888_s1 + $0x30] sm:$0xff]   ;;  %v694_v17 = vld [vmem:[%s888_s1 + $0x38] sm:$0xff]  }
   0x7   :  { %602 = vmatpush3.bf16.msra.mxu0 %v682_v3  ;;  %672 = vmatpush3.bf16.msra.mxu1 %v682_v3  ;;  %v695_v18 = vld [vmem:[%s889_s0] ss:$8 sps:$4 sm:$0xff]   ;;  %v698_v20 = vld [vmem:[%s889_s0 + $0x14] ss:$8 sps:$4 sm:$0xff]   ;;  %v700_v22 = vld [vmem:[%s889_s0 + $0x10] ss:$8 sps:$4 sm:$0xff]  }
   0x8   :  { %603 = vmatprep.subr.bf16.mxu0 %v683_v4  ;;  %665 = vmatprep.subr.bf16.mxu1 %v683_v4  ;;  %v701_v19 = vld [vmem:[%s889_s0 + $0x40] ss:$8 sps:$4 sm:$0xff]   ;;  %v707_v21 = vld [vmem:[%s889_s0 + $0x54] ss:$8 sps:$4 sm:$0xff]   ;;  %v709_v23 = vld [vmem:[%s889_s0 + $0x50] ss:$8 sps:$4 sm:$0xff]  }
   0x9   :  { %303 = vmatprep.mubr.bf16.mxu1 %v703_v13  ;;  %v704_v24 = vld [vmem:[%s889_s0 + $0x24] ss:$8 sps:$4 sm:$0xff]   ;;  %v706_v26 = vld [vmem:[%s889_s0 + $0x20] ss:$8 sps:$4 sm:$0xff]   ;;  %v710_v28 = vld [vmem:[%s889_s0 + $0x34] ss:$8 sps:$4 sm:$0xff]  }
   0xa   :  { %v713_v25 = vld [vmem:[%s889_s0 + $0x64] ss:$8 sps:$4 sm:$0xff]   ;;  %v715_v27 = vld [vmem:[%s889_s0 + $0x60] ss:$8 sps:$4 sm:$0xff]   ;;  %v716_v29 = vld [vmem:[%s889_s0 + $0x74] ss:$8 sps:$4 sm:$0xff]  }
   0xb   :  { %604 = vmatpush3.bf16.msra.mxu0 %v684_v5  ;;  %673 = vmatpush3.bf16.msra.mxu1 %v684_v5  ;;  %v712_v30 = vld [vmem:[%s889_s0 + $0x30] ss:$8 sps:$4 sm:$0xff]  }
   0xc   :  { %605 = vmatprep.subr.bf16.mxu0 %v685_v6  ;;  %666 = vmatprep.subr.bf16.mxu1 %v685_v6  ;;  %v718_v31 = vld [vmem:[%s889_s0 + $0x70] ss:$8 sps:$4 sm:$0xff]  }
   0xf   :  { %606 = vmatpush3.bf16.msra.mxu0 %v686_v7  ;;  %674 = vmatpush3.bf16.msra.mxu1 %v686_v7 }
  0x10   :  { %607 = vmatprep.subr.bf16.mxu0 %v687_v8  ;;  %667 = vmatprep.subr.bf16.mxu1 %v687_v8 }
  0x13   :  { %608 = vmatpush3.bf16.msra.mxu0 %v688_v9  ;;  %675 = vmatpush3.bf16.msra.mxu1 %v688_v9 }
  0x14   :  { %609 = vmatprep.subr.bf16.mxu0 %v689_v10  ;;  %668 = vmatprep.subr.bf16.mxu1 %v689_v10 }
  0x17   :  { %610 = vmatpush3.bf16.msra.mxu0 %v690_v12  ;;  %676 = vmatpush3.bf16.msra.mxu1 %v690_v12 }
  0x18   :  { %611 = vmatprep.subr.bf16.mxu0 %v691_v14  ;;  %669 = vmatprep.subr.bf16.mxu1 %v691_v14 }
  0x1b   :  { %612 = vmatpush3.bf16.msra.mxu0 %v692_v15  ;;  %677 = vmatpush3.bf16.msra.mxu1 %v692_v15 }
  0x1c   :  { %613 = vmatprep.subr.bf16.mxu0 %v693_v16  ;;  %670 = vmatprep.subr.bf16.mxu1 %v693_v16 }
  0x1f   :  { %614 = vmatpush3.bf16.msra.mxu0 %v694_v17  ;;  %678 = vmatpush3.bf16.msra.mxu1 %v694_v17 }
  0x22   :  { %272 = vmatmul.mubr.bf16.vlgmr.msra.gmra.mrb[0].mxu0 %v695_v18  ;;  %304 = vmatmul.mubr.bf16.vlgmr.msra.gmra.mrb[0].mxu1 %v701_v19 }
  0x23   :  { %279 = vmatprep.mubr.bf16.mxu0 %v698_v20  ;;  %311 = vmatprep.mubr.bf16.mxu1 %v707_v21 }
  0x2a   :  { %280 = vmatmul.mubr.bf16.gmra.mrb[4].mxu0 %v700_v22  ;;  %312 = vmatmul.mubr.bf16.gmra.mrb[4].mxu1 %v709_v23 }
  0x2b   :  { %287 = vmatprep.mubr.bf16.mxu0 %v704_v24  ;;  %319 = vmatprep.mubr.bf16.mxu1 %v713_v25 }
  0x32   :  { %288 = vmatmul.mubr.bf16.gmra.mrb[8].mxu0 %v706_v26  ;;  %320 = vmatmul.mubr.bf16.gmra.mrb[8].mxu1 %v715_v27 }
  0x33   :  { %295 = vmatprep.mubr.bf16.mxu0 %v710_v28  ;;  %327 = vmatprep.mubr.bf16.mxu1 %v716_v29 }
  0x3a   :  { %296 = vmatmul.mubr.bf16.gmra.mrb[12].mxu0 %v712_v30  ;;  %328 = vmatmul.mubr.bf16.gmra.mrb[12].mxu1 %v718_v31 }
  0xf5   :  { %v615_v32 = vpop.f32.mrb[0].mxu0  ;;  %v639_v33 = vpop.f32.mrb[0].mxu1 }
  0xf6   :  { %v616_v34 = vpop.f32.mrb[1].mxu0  ;;  %v640_v35 = vpop.f32.mrb[1].mxu1 }
  0xf7   :  { %v617_v36 = vadd.f32 %v616_v34, %v615_v32  ;;  %v618_v37 = vpop.f32.mrb[2].mxu0  ;;  %v840_v38 = vadd.f32 %v640_v35, %v639_v33  ;;  %v642_v39 = vpop.f32.mrb[2].mxu1 }
  0xf8   :  { %v619_v40 = vpop.f32.mrb[3].mxu0  ;;  %v643_v41 = vpop.f32.mrb[3].mxu1 }
  0xf9   :  { %v620_v42 = vadd.f32 %v619_v40, %v618_v37  ;;  %v842_v43 = vadd.f32 %v643_v41, %v642_v39  ;;  %v437_v44 = vmul.f32 %v617_v36, %v617_v36 }
  0xfb   :  { %v555_v45 = vpack.c.bf16 %v620_v42, %v617_v36  ;;  %v416_v46 = vadd.f32 %v620_v42, %v617_v36  ;;  %v438_v47 = vmul.f32 %v620_v42, %v620_v42  ;;  %v575_v48 = vpack.c.bf16 %v842_v43, %v840_v38 }
  0xfd   :  { %556 = vst [vmem:[%s890_s2] sm:$0xff] %v555_v45   ;;  %v453_v49 = vadd.f32 %v438_v47, %v437_v44  ;;  %v621_v50 = vpop.f32.mrb[4].mxu0  ;;  %595 = vst [vmem:[%s890_s2 + $0x20] sm:$0xff] %v575_v48   ;;  %v645_v51 = vpop.f32.mrb[4].mxu1  ;;  %v445_v47 = vmul.f32 %v840_v38, %v840_v38 }
  0xfe   :  { %v622_v52 = vpop.f32.mrb[5].mxu0  ;;  %v646_v53 = vpop.f32.mrb[5].mxu1 }
  0xff   :  { %v623_v54 = vadd.f32 %v622_v52, %v621_v50  ;;  %v624_v55 = vpop.f32.mrb[6].mxu0  ;;  %v852_v56 = vadd.f32 %v646_v53, %v645_v51  ;;  %v648_v57 = vpop.f32.mrb[6].mxu1  ;;  %v446_v50 = vmul.f32 %v842_v43, %v842_v43 }
 0x100   :  { %v625_v58 = vpop.f32.mrb[7].mxu0  ;;  %v649_v59 = vpop.f32.mrb[7].mxu1 }
 0x101   :  { %v417_v60 = vadd.f32 %v623_v54, %v416_v46  ;;  %v439_v61 = vmul.f32 %v623_v54, %v623_v54  ;;  %v626_v62 = vadd.f32 %v625_v58, %v624_v55  ;;  %v650_v63 = vadd.f32 %v649_v59, %v648_v57 }
 0x102   :  { %v447_v53 = vmul.f32 %v852_v56, %v852_v56 }
 0x103   :  { %v454_v0 = vadd.f32 %v453_v49, %v439_v61  ;;  %v560_v1 = vpack.c.bf16 %v626_v62, %v623_v54  ;;  %v418_v2 = vadd.f32 %v626_v62, %v417_v60  ;;  %v440_v3 = vmul.f32 %v626_v62, %v626_v62 }
 0x104   :  { %v580_v4 = vpack.c.bf16 %v650_v63, %v852_v56  ;;  %v448_v57 = vmul.f32 %v650_v63, %v650_v63 }
 0x105   :  { %592 = vst [vmem:[%s890_s2 + $0x8] sm:$0xff] %v560_v1   ;;  %v455_v5 = vadd.f32 %v454_v0, %v440_v3  ;;  %v627_v6 = vpop.f32.mrb[8].mxu0  ;;  %v651_v7 = vpop.f32.mrb[8].mxu1 }
 0x106   :  { %v628_v8 = vpop.f32.mrb[9].mxu0  ;;  %596 = vst [vmem:[%s890_s2 + $0x28] sm:$0xff] %v580_v4   ;;  %v652_v9 = vpop.f32.mrb[9].mxu1 }
 0x107   :  { %v629_v10 = vadd.f32 %v628_v8, %v627_v6  ;;  %v630_v11 = vpop.f32.mrb[10].mxu0  ;;  %v653_v12 = vadd.f32 %v652_v9, %v651_v7  ;;  %v654_v13 = vpop.f32.mrb[10].mxu1 }
 0x108   :  { %v631_v14 = vpop.f32.mrb[11].mxu0  ;;  %v655_v15 = vpop.f32.mrb[11].mxu1 }
 0x109   :  { %v419_v16 = vadd.f32 %v629_v10, %v418_v2  ;;  %v441_v17 = vmul.f32 %v629_v10, %v629_v10  ;;  %v632_v18 = vadd.f32 %v631_v14, %v630_v11  ;;  %v656_v19 = vadd.f32 %v655_v15, %v654_v13 }
 0x10a   :  { %v449_v60 = vmul.f32 %v653_v12, %v653_v12 }
 0x10b   :  { %v456_v20 = vadd.f32 %v455_v5, %v441_v17  ;;  %v565_v21 = vpack.c.bf16 %v632_v18, %v629_v10  ;;  %v420_v22 = vadd.f32 %v632_v18, %v419_v16  ;;  %v442_v23 = vmul.f32 %v632_v18, %v632_v18 }
 0x10c   :  { %v585_v24 = vpack.c.bf16 %v656_v19, %v653_v12  ;;  %v450_v1 = vmul.f32 %v656_v19, %v656_v19 }
 0x10d   :  { %593 = vst [vmem:[%s890_s2 + $0x10] sm:$0xff] %v565_v21   ;;  %v457_v25 = vadd.f32 %v456_v20, %v442_v23  ;;  %v633_v26 = vpop.f32.mrb[12].mxu0  ;;  %v657_v27 = vpop.f32.mrb[12].mxu1 }
 0x10e   :  { %v634_v28 = vpop.f32.mrb[13].mxu0  ;;  %597 = vst [vmem:[%s890_s2 + $0x30] sm:$0xff] %v585_v24   ;;  %v658_v29 = vpop.f32.mrb[13].mxu1 }
 0x10f   :  { %v635_v30 = vadd.f32 %v634_v28, %v633_v26  ;;  %v636_v31 = vpop.f32.mrb[14].mxu0  ;;  %v659_v32 = vadd.f32 %v658_v29, %v657_v27  ;;  %v660_v33 = vpop.f32.mrb[14].mxu1 }
 0x110   :  { %v637_v34 = vpop.f32.mrb[15].mxu0  ;;  %v661_v35 = vpop.f32.mrb[15].mxu1 }
 0x111   :  { %v421_v36 = vadd.f32 %v635_v30, %v420_v22  ;;  %v443_v37 = vmul.f32 %v635_v30, %v635_v30  ;;  %v638_v39 = vadd.f32 %v637_v34, %v636_v31  ;;  %v662_v40 = vadd.f32 %v661_v35, %v660_v33 }
 0x112   :  { %v451_v2 = vmul.f32 %v659_v32, %v659_v32 }
 0x113   :  { %v458_v41 = vadd.f32 %v457_v25, %v443_v37  ;;  %v570_v42 = vpack.c.bf16 %v638_v39, %v635_v30  ;;  %v422_v44 = vadd.f32 %v638_v39, %v421_v36  ;;  %v444_v45 = vmul.f32 %v638_v39, %v638_v39 }
 0x114   :  { %v590_v46 = vpack.c.bf16 %v662_v40, %v659_v32  ;;  %v452_v6 = vmul.f32 %v662_v40, %v662_v40 }
 0x115   :  { %594 = vst [vmem:[%s890_s2 + $0x18] sm:$0xff] %v570_v42   ;;  %v423_v48 = vadd.f32 %v840_v38, %v422_v44  ;;  %v459_v49 = vadd.f32 %v458_v41, %v444_v45 }
 0x116   :  { %598 = vst [vmem:[%s890_s2 + $0x38] sm:$0xff] %v590_v46  }
 0x117   :  { %v424_v51 = vadd.f32 %v842_v43, %v423_v48  ;;  %v460_v52 = vadd.f32 %v459_v49, %v445_v47 }
 0x119   :  { %v461_v54 = vadd.f32 %v460_v52, %v446_v50  ;;  %v425_v55 = vadd.f32 %v852_v56, %v424_v51 }
 0x11b   :  { %v426_v58 = vadd.f32 %v650_v63, %v425_v55  ;;  %v462_v38 = vadd.f32 %v461_v54, %v447_v53 }
 0x11d   :  { %v427_v59 = vadd.f32 %v653_v12, %v426_v58  ;;  %v463_v61 = vadd.f32 %v462_v38, %v448_v57 }
 0x11f   :  { %v464_v62 = vadd.f32 %v463_v61, %v449_v60  ;;  %v428_v0 = vadd.f32 %v656_v19, %v427_v59 }
 0x121   :  { %v465_v3 = vadd.f32 %v464_v62, %v450_v1  ;;  %v429_v4 = vadd.f32 %v659_v32, %v428_v0 }
 0x123   :  { %v466_v43 = vadd.f32 %v465_v3, %v451_v2  ;;  %v430_v5 = vadd.f32 %v662_v40, %v429_v4 }
 0x125   :  { %v431_v7 = vrot.slane %v430_v5, 4  ;;  %v467_v8 = vadd.f32 %v466_v43, %v452_v6 }
 0x127   :  { %v432_v9 = vadd.f32 %v431_v7, %v430_v5  ;;  %v468_v10 = vrot.slane %v467_v8, 4 }
 0x129   :  { %v433_v56 = vrot.slane %v432_v9, 2  ;;  %v469_v11 = vadd.f32 %v468_v10, %v467_v8 }
 0x12b   :  { %v434_v63 = vadd.f32 %v433_v56, %v432_v9  ;;  %v470_v13 = vrot.slane %v469_v11, 2 }
 0x12d   :  { %v435_v14 = vrot.slane %v434_v63, 1  ;;  %v471_v12 = vadd.f32 %v470_v13, %v469_v11 }
 0x12f   :  { %v436_v15 = vadd.f32 %v435_v14, %v434_v63  ;;  %v472_v16 = vrot.slane %v471_v12, 1 }
 0x131   :  { %v473_v17 = vadd.f32 %v472_v16, %v471_v12  ;;  %474 = vst [vmem:[%s891_s3] sm:$0xff] %v436_v15 }
 0x133   :  { %475 = vst [vmem:[%s892_s4] sm:$0xff] %v473_v17 }

// kernel: discriminator_forward.8
= control target key start
LH: loop header
LB: loop body
LE: loop exit
PB: predicated region body
PF: predicated region fallthrough
CT: control target
= control target key end

     0   :  { %s789_s1 = inlined_call_operand.vmem [shape: bf16[512,128], index: 1, kind: input, shape index: {}]   ;;  %s790_s0 = inlined_call_operand.vmem [shape: bf16[32,512], index: 0, kind: input, shape index: {}]   ;;  %s791_s2 = inlined_call_operand.vmem [shape: bf16[32,128], index: 2, kind: output, shape index: {0}]   ;;  %s792_s3 = inlined_call_operand.vmem [shape: f32[8,128], index: 3, kind: output, shape index: {1}]   ;;  %s793_s4 = inlined_call_operand.vmem [shape: f32[8,128], index: 4, kind: output, shape index: {2}]  }
   0x1   :  { %v588_v0 = vld [vmem:[%s789_s1 + $0x40] sm:$0xff]   ;;  %v592_v4 = vld [vmem:[%s789_s1 + $0x48] sm:$0xff]   ;;  %v596_v8 = vld [vmem:[%s789_s1 + $0x50] sm:$0xff]  }
   0x2   :  { %v589_v1 = vld [vmem:[%s789_s1 + $0xc0] sm:$0xff]   ;;  %532 = vmatprep.subr.bf16.mxu0 %v588_v0  ;;  %v593_v5 = vld [vmem:[%s789_s1 + $0xc8] sm:$0xff]   ;;  %v597_v9 = vld [vmem:[%s789_s1 + $0xd0] sm:$0xff]  }
   0x3   :  { %v590_v2 = vld [vmem:[%s789_s1] sm:$0xff]   ;;  %560 = vmatprep.subr.bf16.mxu1 %v589_v1  ;;  %v594_v6 = vld [vmem:[%s789_s1 + $0x8] sm:$0xff]   ;;  %v598_v10 = vld [vmem:[%s789_s1 + $0x10] sm:$0xff]  }
   0x4   :  { %v591_v3 = vld [vmem:[%s789_s1 + $0x80] sm:$0xff]   ;;  %533 = vmatpush3.bf16.msra.mxu0 %v590_v2  ;;  %v595_v7 = vld [vmem:[%s789_s1 + $0x88] sm:$0xff]   ;;  %v599_v11 = vld [vmem:[%s789_s1 + $0x90] sm:$0xff]  }
   0x5   :  { %561 = vmatpush3.bf16.msra.mxu1 %v591_v3  ;;  %534 = vmatprep.subr.bf16.mxu0 %v592_v4  ;;  %v600_v12 = vld [vmem:[%s789_s1 + $0x58] sm:$0xff]   ;;  %v604_v16 = vld [vmem:[%s789_s1 + $0x60] sm:$0xff]   ;;  %v608_v20 = vld [vmem:[%s789_s1 + $0x68] sm:$0xff]  }
   0x6   :  { %562 = vmatprep.subr.bf16.mxu1 %v593_v5  ;;  %v601_v13 = vld [vmem:[%s789_s1 + $0xd8] sm:$0xff]   ;;  %v605_v17 = vld [vmem:[%s789_s1 + $0xe0] sm:$0xff]   ;;  %v609_v21 = vld [vmem:[%s789_s1 + $0xe8] sm:$0xff]  }
   0x7   :  { %v602_v14 = vld [vmem:[%s789_s1 + $0x18] sm:$0xff]   ;;  %v606_v18 = vld [vmem:[%s789_s1 + $0x20] sm:$0xff]   ;;  %v610_v22 = vld [vmem:[%s789_s1 + $0x28] sm:$0xff]  }
   0x8   :  { %535 = vmatpush3.bf16.msra.mxu0 %v594_v6  ;;  %v603_v15 = vld [vmem:[%s789_s1 + $0x98] sm:$0xff]   ;;  %v607_v19 = vld [vmem:[%s789_s1 + $0xa0] sm:$0xff]   ;;  %v611_v23 = vld [vmem:[%s789_s1 + $0xa8] sm:$0xff]  }
   0x9   :  { %563 = vmatpush3.bf16.msra.mxu1 %v595_v7  ;;  %536 = vmatprep.subr.bf16.mxu0 %v596_v8  ;;  %v612_v24 = vld [vmem:[%s789_s1 + $0x70] sm:$0xff]   ;;  %v616_v28 = vld [vmem:[%s789_s1 + $0x78] sm:$0xff]  }
   0xa   :  { %564 = vmatprep.subr.bf16.mxu1 %v597_v9  ;;  %v613_v25 = vld [vmem:[%s789_s1 + $0xf0] sm:$0xff]   ;;  %v617_v29 = vld [vmem:[%s789_s1 + $0xf8] sm:$0xff]  }
   0xb   :  { %v614_v26 = vld [vmem:[%s789_s1 + $0x30] sm:$0xff]   ;;  %v618_v30 = vld [vmem:[%s789_s1 + $0x38] sm:$0xff]  }
   0xc   :  { %537 = vmatpush3.bf16.msra.mxu0 %v598_v10  ;;  %v615_v27 = vld [vmem:[%s789_s1 + $0xb0] sm:$0xff]   ;;  %v619_v31 = vld [vmem:[%s789_s1 + $0xb8] sm:$0xff]  }
   0xd   :  { %565 = vmatpush3.bf16.msra.mxu1 %v599_v11  ;;  %538 = vmatprep.subr.bf16.mxu0 %v600_v12  ;;  %v620_v32 = vld [vmem:[%s790_s0] ss:$16 sps:$4 sm:$0xff]   ;;  %v622_v33 = vld [vmem:[%s790_s0 + $0x4] ss:$16 sps:$4 sm:$0xff]   ;;  %v623_v34 = vld [vmem:[%s790_s0 + $0x8] ss:$16 sps:$4 sm:$0xff]  }
   0xe   :  { %566 = vmatprep.subr.bf16.mxu1 %v601_v13  ;;  %v625_v35 = vld [vmem:[%s790_s0 + $0xc] ss:$16 sps:$4 sm:$0xff]   ;;  %351 = vmatprep.mubr.bf16.mxu0 %v622_v33  ;;  %v626_v36 = vld [vmem:[%s790_s0 + $0x24] ss:$16 sps:$4 sm:$0xff]   ;;  %v630_v38 = vld [vmem:[%s790_s0 + $0x20] ss:$16 sps:$4 sm:$0xff]  }
   0xf   :  { %400 = vmatprep.mubr.bf16.mxu1 %v625_v35  ;;  %v628_v37 = vld [vmem:[%s790_s0 + $0x2c] ss:$16 sps:$4 sm:$0xff]   ;;  %v631_v39 = vld [vmem:[%s790_s0 + $0x28] ss:$16 sps:$4 sm:$0xff]  }
  0x10   :  { %539 = vmatpush3.bf16.msra.mxu0 %v602_v14 }
  0x11   :  { %567 = vmatpush3.bf16.msra.mxu1 %v603_v15  ;;  %540 = vmatprep.subr.bf16.mxu0 %v604_v16 }
  0x12   :  { %568 = vmatprep.subr.bf16.mxu1 %v605_v17 }
  0x14   :  { %541 = vmatpush3.bf16.msra.mxu0 %v606_v18 }
  0x15   :  { %569 = vmatpush3.bf16.msra.mxu1 %v607_v19  ;;  %542 = vmatprep.subr.bf16.mxu0 %v608_v20 }
  0x16   :  { %570 = vmatprep.subr.bf16.mxu1 %v609_v21 }
  0x18   :  { %543 = vmatpush3.bf16.msra.mxu0 %v610_v22 }
  0x19   :  { %571 = vmatpush3.bf16.msra.mxu1 %v611_v23  ;;  %544 = vmatprep.subr.bf16.mxu0 %v612_v24 }
  0x1a   :  { %572 = vmatprep.subr.bf16.mxu1 %v613_v25 }
  0x1c   :  { %545 = vmatpush3.bf16.msra.mxu0 %v614_v26 }
  0x1d   :  { %573 = vmatpush3.bf16.msra.mxu1 %v615_v27  ;;  %546 = vmatprep.subr.bf16.mxu0 %v616_v28 }
  0x1e   :  { %574 = vmatprep.subr.bf16.mxu1 %v617_v29 }
  0x20   :  { %547 = vmatpush3.bf16.msra.mxu0 %v618_v30 }
  0x21   :  { %575 = vmatpush3.bf16.msra.mxu1 %v619_v31 }
  0x23   :  { %352 = vmatmul.mubr.bf16.vlgmr.msra.gmra.mrb[0].mxu0 %v620_v32 }
  0x24   :  { %401 = vmatmul.mubr.bf16.vlgmr.msra.gmra.mrb[0].mxu1 %v623_v34  ;;  %359 = vmatprep.mubr.bf16.mxu0 %v626_v36 }
  0x25   :  { %408 = vmatprep.mubr.bf16.mxu1 %v628_v37 }
  0x2b   :  { %360 = vmatmul.mubr.bf16.gmra.mrb[4].mxu0 %v630_v38 }
  0x2c   :  { %409 = vmatmul.mubr.bf16.gmra.mrb[4].mxu1 %v631_v39 }
  0xf6   :  { %v548_v40 = vpop.f32.mrb[0].mxu0 }
  0xf7   :  { %v576_v41 = vpop.f32.mrb[0].mxu1  ;;  %v549_v42 = vpop.f32.mrb[1].mxu0 }
  0xf8   :  { %v550_v43 = vadd.f32 %v549_v42, %v548_v40  ;;  %v577_v44 = vpop.f32.mrb[1].mxu1  ;;  %v551_v45 = vpop.f32.mrb[2].mxu0 }
  0xf9   :  { %v578_v46 = vadd.f32 %v577_v44, %v576_v41  ;;  %v579_v47 = vpop.f32.mrb[2].mxu1  ;;  %v552_v48 = vpop.f32.mrb[3].mxu0 }
  0xfa   :  { %v553_v49 = vadd.f32 %v552_v48, %v551_v45  ;;  %v580_v50 = vpop.f32.mrb[3].mxu1 }
  0xfb   :  { %v403_v51 = vadd.f32 %v578_v46, %v550_v43  ;;  %v581_v52 = vadd.f32 %v580_v50, %v579_v47 }
  0xfd   :  { %v406_v53 = vadd.f32 %v581_v52, %v553_v49  ;;  %v446_v55 = vmul.f32 %v403_v51, %v403_v51 }
  0xfe   :  { %v554_v54 = vpop.f32.mrb[4].mxu0 }
  0xff   :  { %v524_v56 = vpack.c.bf16 %v406_v53, %v403_v51  ;;  %v437_v57 = vadd.f32 %v406_v53, %v403_v51  ;;  %v447_v58 = vmul.f32 %v406_v53, %v406_v53  ;;  %v582_v59 = vpop.f32.mrb[4].mxu1  ;;  %v555_v60 = vpop.f32.mrb[5].mxu0 }
 0x100   :  { %v556_v61 = vadd.f32 %v555_v60, %v554_v54  ;;  %v583_v62 = vpop.f32.mrb[5].mxu1  ;;  %v557_v63 = vpop.f32.mrb[6].mxu0 }
 0x101   :  { %525 = vst [vmem:[%s791_s2] sm:$0xff] %v524_v56   ;;  %v450_v0 = vadd.f32 %v447_v58, %v446_v55  ;;  %v584_v1 = vadd.f32 %v583_v62, %v582_v59  ;;  %v585_v2 = vpop.f32.mrb[6].mxu1  ;;  %v558_v3 = vpop.f32.mrb[7].mxu0 }
 0x102   :  { %v559_v4 = vadd.f32 %v558_v3, %v557_v63  ;;  %v586_v5 = vpop.f32.mrb[7].mxu1 }
 0x103   :  { %v411_v6 = vadd.f32 %v584_v1, %v556_v61  ;;  %v587_v7 = vadd.f32 %v586_v5, %v585_v2 }
 0x105   :  { %v438_v8 = vadd.f32 %v437_v57, %v411_v6  ;;  %v448_v9 = vmul.f32 %v411_v6, %v411_v6  ;;  %v414_v10 = vadd.f32 %v587_v7, %v559_v4 }
 0x107   :  { %v451_v11 = vadd.f32 %v450_v0, %v448_v9  ;;  %v529_v12 = vpack.c.bf16 %v414_v10, %v411_v6  ;;  %v439_v13 = vadd.f32 %v438_v8, %v414_v10  ;;  %v449_v14 = vmul.f32 %v414_v10, %v414_v10 }
 0x109   :  { %531 = vst [vmem:[%s791_s2 + $0x8] sm:$0xff] %v529_v12   ;;  %v440_v15 = vrot.slane %v439_v13, 4  ;;  %v452_v16 = vadd.f32 %v451_v11, %v449_v14 }
 0x10b   :  { %v441_v17 = vadd.f32 %v440_v15, %v439_v13  ;;  %v453_v18 = vrot.slane %v452_v16, 4 }
 0x10d   :  { %v442_v19 = vrot.slane %v441_v17, 2  ;;  %v454_v20 = vadd.f32 %v453_v18, %v452_v16 }
 0x10f   :  { %v443_v21 = vadd.f32 %v442_v19, %v441_v17  ;;  %v455_v22 = vrot.slane %v454_v20, 2 }
 0x111   :  { %v444_v23 = vrot.slane %v443_v21, 1  ;;  %v456_v24 = vadd.f32 %v455_v22, %v454_v20 }
 0x113   :  { %v445_v25 = vadd.f32 %v444_v23, %v443_v21  ;;  %v457_v26 = vrot.slane %v456_v24, 1 }
 0x115   :  { %v458_v27 = vadd.f32 %v457_v26, %v456_v24  ;;  %459 = vst [vmem:[%s792_s3] sm:$0xff] %v445_v25 }
 0x117   :  { %460 = vst [vmem:[%s793_s4] sm:$0xff] %v458_v27 }

// kernel: discriminator_forward.9
= control target key start
LH: loop header
LB: loop body
LE: loop exit
PB: predicated region body
PF: predicated region fallthrough
CT: control target
= control target key end

     0   :  { %s1205_s1 = inlined_call_operand.vmem [shape: bf16[1024,128], index: 1, kind: input, shape index: {}]   ;;  %s1206_s0 = inlined_call_operand.vmem [shape: bf16[8,1024], index: 0, kind: input, shape index: {}]   ;;  %s1207_s2 = inlined_call_operand.vmem [shape: f32[1,128], index: 2, kind: input, shape index: {}]   ;;  %s1208_s3 = inlined_call_operand.vmem [shape: f32[8,128], index: 3, kind: output, shape index: {}]  }
   0x1   :  { %v899_v0 = vld [vmem:[%s1205_s1 + $0x40] sm:$0xff]   ;;  %v903_v4 = vld [vmem:[%s1205_s1 + $0x48] sm:$0xff]   ;;  %v907_v8 = vld [vmem:[%s1205_s1 + $0x50] sm:$0xff]  }
   0x2   :  { %v900_v1 = vld [vmem:[%s1205_s1 + $0xc0] sm:$0xff]   ;;  %811 = vmatprep.subr.bf16.mxu0 %v899_v0  ;;  %v904_v5 = vld [vmem:[%s1205_s1 + $0xc8] sm:$0xff]   ;;  %v908_v9 = vld [vmem:[%s1205_s1 + $0xd0] sm:$0xff]  }
   0x3   :  { %v901_v2 = vld [vmem:[%s1205_s1] sm:$0xff]   ;;  %833 = vmatprep.subr.bf16.mxu1 %v900_v1  ;;  %v905_v6 = vld [vmem:[%s1205_s1 + $0x8] sm:$0xff]   ;;  %v909_v10 = vld [vmem:[%s1205_s1 + $0x10] sm:$0xff]  }
   0x4   :  { %v902_v3 = vld [vmem:[%s1205_s1 + $0x80] sm:$0xff]   ;;  %812 = vmatpush3.bf16.msra.mxu0 %v901_v2  ;;  %v906_v7 = vld [vmem:[%s1205_s1 + $0x88] sm:$0xff]   ;;  %v910_v11 = vld [vmem:[%s1205_s1 + $0x90] sm:$0xff]  }
   0x5   :  { %834 = vmatpush3.bf16.msra.mxu1 %v902_v3  ;;  %813 = vmatprep.subr.bf16.mxu0 %v903_v4  ;;  %v911_v12 = vld [vmem:[%s1205_s1 + $0x58] sm:$0xff]   ;;  %v915_v16 = vld [vmem:[%s1205_s1 + $0x60] sm:$0xff]   ;;  %v919_v20 = vld [vmem:[%s1205_s1 + $0x68] sm:$0xff]  }
   0x6   :  { %835 = vmatprep.subr.bf16.mxu1 %v904_v5  ;;  %v912_v13 = vld [vmem:[%s1205_s1 + $0xd8] sm:$0xff]   ;;  %v916_v17 = vld [vmem:[%s1205_s1 + $0xe0] sm:$0xff]   ;;  %v920_v21 = vld [vmem:[%s1205_s1 + $0xe8] sm:$0xff]  }
   0x7   :  { %v913_v14 = vld [vmem:[%s1205_s1 + $0x18] sm:$0xff]   ;;  %v917_v18 = vld [vmem:[%s1205_s1 + $0x20] sm:$0xff]   ;;  %v921_v22 = vld [vmem:[%s1205_s1 + $0x28] sm:$0xff]  }
   0x8   :  { %814 = vmatpush3.bf16.msra.mxu0 %v905_v6  ;;  %v914_v15 = vld [vmem:[%s1205_s1 + $0x98] sm:$0xff]   ;;  %v918_v19 = vld [vmem:[%s1205_s1 + $0xa0] sm:$0xff]   ;;  %v922_v23 = vld [vmem:[%s1205_s1 + $0xa8] sm:$0xff]  }
   0x9   :  { %836 = vmatpush3.bf16.msra.mxu1 %v906_v7  ;;  %815 = vmatprep.subr.bf16.mxu0 %v907_v8  ;;  %v923_v24 = vld [vmem:[%s1205_s1 + $0x70] sm:$0xff]   ;;  %v927_v28 = vld [vmem:[%s1205_s1 + $0x78] sm:$0xff]   ;;  %v15_v32 = vld [vmem:[%s1206_s0] sm:$0xff] }
   0xa   :  { %837 = vmatprep.subr.bf16.mxu1 %v908_v9  ;;  %v924_v25 = vld [vmem:[%s1205_s1 + $0xf0] sm:$0xff]   ;;  %v928_v29 = vld [vmem:[%s1205_s1 + $0xf8] sm:$0xff]   ;;  %v16_v33 = vld [vmem:[%s1206_s0 + $0x8] sm:$0xff]  ;;  %v738_v34 = vcombine.low %v15_v32, %v15_v32  ;;  %v739_v35 = vcombine.high %v15_v32, %v15_v32 }
   0xb   :  { %v925_v26 = vld [vmem:[%s1205_s1 + $0x30] sm:$0xff]   ;;  %v929_v30 = vld [vmem:[%s1205_s1 + $0x38] sm:$0xff]   ;;  %v740_v36 = vcombine.low %v16_v33, %v16_v33  ;;  %v741_v37 = vcombine.high %v16_v33, %v16_v33  ;;  %v935_v38 = vld [vmem:[%s1205_s1 + $0x140] sm:$0xff]  }
   0xc   :  { %816 = vmatpush3.bf16.msra.mxu0 %v909_v10  ;;  %v926_v27 = vld [vmem:[%s1205_s1 + $0xb0] sm:$0xff]   ;;  %v930_v31 = vld [vmem:[%s1205_s1 + $0xb8] sm:$0xff]   ;;  %v936_v39 = vld [vmem:[%s1205_s1 + $0x1c0] sm:$0xff]   ;;  %598 = vmatprep.mubr.bf16.mxu0 %v739_v35 }
   0xd   :  { %838 = vmatpush3.bf16.msra.mxu1 %v910_v11  ;;  %817 = vmatprep.subr.bf16.mxu0 %v911_v12  ;;  %v937_v40 = vld [vmem:[%s1205_s1 + $0x100] sm:$0xff]   ;;  %v939_v42 = vld [vmem:[%s1205_s1 + $0x148] sm:$0xff]   ;;  %v943_v46 = vld [vmem:[%s1205_s1 + $0x150] sm:$0xff]  }
   0xe   :  { %839 = vmatprep.subr.bf16.mxu1 %v912_v13  ;;  %638 = vmatprep.mubr.bf16.mxu1 %v741_v37  ;;  %v938_v41 = vld [vmem:[%s1205_s1 + $0x180] sm:$0xff]   ;;  %v940_v43 = vld [vmem:[%s1205_s1 + $0x1c8] sm:$0xff]   ;;  %v944_v47 = vld [vmem:[%s1205_s1 + $0x1d0] sm:$0xff]  }
   0xf   :  { %v941_v44 = vld [vmem:[%s1205_s1 + $0x108] sm:$0xff]   ;;  %v945_v48 = vld [vmem:[%s1205_s1 + $0x110] sm:$0xff]   ;;  %v947_v50 = vld [vmem:[%s1205_s1 + $0x158] sm:$0xff]  }
  0x10   :  { %818 = vmatpush3.bf16.msra.mxu0 %v913_v14  ;;  %v942_v45 = vld [vmem:[%s1205_s1 + $0x188] sm:$0xff]   ;;  %v946_v49 = vld [vmem:[%s1205_s1 + $0x190] sm:$0xff]   ;;  %v948_v51 = vld [vmem:[%s1205_s1 + $0x1d8] sm:$0xff]  }
  0x11   :  { %840 = vmatpush3.bf16.msra.mxu1 %v914_v15  ;;  %819 = vmatprep.subr.bf16.mxu0 %v915_v16  ;;  %v949_v52 = vld [vmem:[%s1205_s1 + $0x118] sm:$0xff]   ;;  %v951_v54 = vld [vmem:[%s1205_s1 + $0x160] sm:$0xff]   ;;  %v955_v58 = vld [vmem:[%s1205_s1 + $0x168] sm:$0xff]  }
  0x12   :  { %841 = vmatprep.subr.bf16.mxu1 %v916_v17  ;;  %v950_v53 = vld [vmem:[%s1205_s1 + $0x198] sm:$0xff]   ;;  %v952_v55 = vld [vmem:[%s1205_s1 + $0x1e0] sm:$0xff]   ;;  %v956_v59 = vld [vmem:[%s1205_s1 + $0x1e8] sm:$0xff]  }
  0x13   :  { %v953_v56 = vld [vmem:[%s1205_s1 + $0x120] sm:$0xff]   ;;  %v957_v60 = vld [vmem:[%s1205_s1 + $0x128] sm:$0xff]   ;;  %v959_v62 = vld [vmem:[%s1205_s1 + $0x170] sm:$0xff]  }
  0x14   :  { %820 = vmatpush3.bf16.msra.mxu0 %v917_v18  ;;  %v954_v57 = vld [vmem:[%s1205_s1 + $0x1a0] sm:$0xff]   ;;  %v958_v61 = vld [vmem:[%s1205_s1 + $0x1a8] sm:$0xff]   ;;  %v960_v63 = vld [vmem:[%s1205_s1 + $0x1f0] sm:$0xff]  }
  0x15   :  { %842 = vmatpush3.bf16.msra.mxu1 %v918_v19  ;;  %821 = vmatprep.subr.bf16.mxu0 %v919_v20  ;;  %v961_v0 = vld [vmem:[%s1205_s1 + $0x130] sm:$0xff]   ;;  %v963_v2 = vld [vmem:[%s1205_s1 + $0x178] sm:$0xff]   ;;  %v737_v14 = vld [vmem:[%s1207_s2] ss:$0 sm:$0xff] }
  0x16   :  { %843 = vmatprep.subr.bf16.mxu1 %v920_v21  ;;  %v962_v1 = vld [vmem:[%s1205_s1 + $0x1b0] sm:$0xff]   ;;  %v964_v3 = vld [vmem:[%s1205_s1 + $0x1f8] sm:$0xff]  }
  0x17   :  { %v965_v4 = vld [vmem:[%s1205_s1 + $0x138] sm:$0xff]   ;;  %v17_v6 = vld [vmem:[%s1206_s0 + $0x10] sm:$0xff] }
  0x18   :  { %822 = vmatpush3.bf16.msra.mxu0 %v921_v22  ;;  %v966_v5 = vld [vmem:[%s1205_s1 + $0x1b8] sm:$0xff]   ;;  %v742_v7 = vcombine.low %v17_v6, %v17_v6  ;;  %v743_v8 = vcombine.high %v17_v6, %v17_v6 }
  0x19   :  { %844 = vmatpush3.bf16.msra.mxu1 %v922_v23  ;;  %823 = vmatprep.subr.bf16.mxu0 %v923_v24  ;;  %v18_v9 = vld [vmem:[%s1206_s0 + $0x18] sm:$0xff] }
  0x1a   :  { %845 = vmatprep.subr.bf16.mxu1 %v924_v25  ;;  %v744_v10 = vcombine.low %v18_v9, %v18_v9  ;;  %v745_v11 = vcombine.high %v18_v9, %v18_v9 }
  0x1c   :  { %824 = vmatpush3.bf16.msra.mxu0 %v925_v26 }
  0x1d   :  { %846 = vmatpush3.bf16.msra.mxu1 %v926_v27  ;;  %825 = vmatprep.subr.bf16.mxu0 %v927_v28 }
  0x1e   :  { %847 = vmatprep.subr.bf16.mxu1 %v928_v29 }
  0x20   :  { %826 = vmatpush3.bf16.msra.mxu0 %v929_v30 }
  0x21   :  { %848 = vmatpush3.bf16.msra.mxu1 %v930_v31  ;;  %855 = vmatprep.subr.bf16.mxu0 %v935_v38 }
  0x22   :  { %877 = vmatprep.subr.bf16.mxu1 %v936_v39 }
  0x23   :  { %599 = vmatmul.mubr.bf16.vlgmr.msra.gmra.mrb[0].mxu0 %v738_v34 }
  0x24   :  { %639 = vmatmul.mubr.bf16.vlgmr.msra.gmra.mrb[0].mxu1 %v740_v36  ;;  %856 = vmatpush3.bf16.msra.mxu0 %v937_v40 }
  0x25   :  { %878 = vmatpush3.bf16.msra.mxu1 %v938_v41  ;;  %857 = vmatprep.subr.bf16.mxu0 %v939_v42 }
  0x26   :  { %879 = vmatprep.subr.bf16.mxu1 %v940_v43  ;;  %678 = vmatprep.mubr.bf16.mxu0 %v743_v8 }
  0x27   :  { %718 = vmatprep.mubr.bf16.mxu1 %v745_v11 }
  0x28   :  { %858 = vmatpush3.bf16.msra.mxu0 %v941_v44 }
  0x29   :  { %880 = vmatpush3.bf16.msra.mxu1 %v942_v45  ;;  %859 = vmatprep.subr.bf16.mxu0 %v943_v46 }
  0x2a   :  { %881 = vmatprep.subr.bf16.mxu1 %v944_v47 }
  0x2c   :  { %860 = vmatpush3.bf16.msra.mxu0 %v945_v48 }
  0x2d   :  { %882 = vmatpush3.bf16.msra.mxu1 %v946_v49  ;;  %861 = vmatprep.subr.bf16.mxu0 %v947_v50 }
  0x2e   :  { %883 = vmatprep.subr.bf16.mxu1 %v948_v51 }
  0x30   :  { %862 = vmatpush3.bf16.msra.mxu0 %v949_v52 }
  0x31   :  { %884 = vmatpush3.bf16.msra.mxu1 %v950_v53  ;;  %863 = vmatprep.subr.bf16.mxu0 %v951_v54 }
  0x32   :  { %885 = vmatprep.subr.bf16.mxu1 %v952_v55 }
  0x34   :  { %864 = vmatpush3.bf16.msra.mxu0 %v953_v56 }
  0x35   :  { %886 = vmatpush3.bf16.msra.mxu1 %v954_v57  ;;  %865 = vmatprep.subr.bf16.mxu0 %v955_v58 }
  0x36   :  { %887 = vmatprep.subr.bf16.mxu1 %v956_v59 }
  0x38   :  { %866 = vmatpush3.bf16.msra.mxu0 %v957_v60 }
  0x39   :  { %888 = vmatpush3.bf16.msra.mxu1 %v958_v61  ;;  %867 = vmatprep.subr.bf16.mxu0 %v959_v62 }
  0x3a   :  { %889 = vmatprep.subr.bf16.mxu1 %v960_v63 }
  0x3c   :  { %868 = vmatpush3.bf16.msra.mxu0 %v961_v0 }
  0x3d   :  { %890 = vmatpush3.bf16.msra.mxu1 %v962_v1  ;;  %869 = vmatprep.subr.bf16.mxu0 %v963_v2 }
  0x3e   :  { %891 = vmatprep.subr.bf16.mxu1 %v964_v3 }
  0x40   :  { %870 = vmatpush3.bf16.msra.mxu0 %v965_v4 }
  0x41   :  { %892 = vmatpush3.bf16.msra.mxu1 %v966_v5 }
  0x43   :  { %679 = vmatmul.mubr.bf16.vlgmr.msra.gmra.mrb[4].mxu0 %v742_v7 }
  0x44   :  { %719 = vmatmul.mubr.bf16.vlgmr.msra.gmra.mrb[4].mxu1 %v744_v10 }
  0xf6   :  { %v827_v12 = vpop.f32.mrb[0].mxu0 }
  0xf7   :  { %v849_v13 = vpop.f32.mrb[0].mxu1  ;;  %v828_v15 = vpop.f32.mrb[1].mxu0 }
  0xf8   :  { %v850_v16 = vpop.f32.mrb[1].mxu1  ;;  %v829_v17 = vadd.f32 %v828_v15, %v827_v12  ;;  %v830_v19 = vpop.f32.mrb[2].mxu0 }
  0xf9   :  { %v851_v18 = vadd.f32 %v850_v16, %v849_v13  ;;  %v852_v20 = vpop.f32.mrb[2].mxu1  ;;  %v831_v21 = vpop.f32.mrb[3].mxu0 }
  0xfa   :  { %v853_v22 = vpop.f32.mrb[3].mxu1  ;;  %v601_v23 = vadd.f32 %v829_v17, %v737_v14 }
  0xfc   :  { %v641_v24 = vadd.f32 %v851_v18, %v601_v23 }
 0x116   :  { %v871_v25 = vpop.f32.mrb[4].mxu0 }
 0x117   :  { %v893_v26 = vpop.f32.mrb[4].mxu1  ;;  %v872_v27 = vpop.f32.mrb[5].mxu0 }
 0x118   :  { %v894_v28 = vpop.f32.mrb[5].mxu1  ;;  %v873_v29 = vadd.f32 %v872_v27, %v871_v25  ;;  %v874_v31 = vpop.f32.mrb[6].mxu0 }
 0x119   :  { %v895_v30 = vadd.f32 %v894_v28, %v893_v26  ;;  %v896_v32 = vpop.f32.mrb[6].mxu1  ;;  %v875_v33 = vpop.f32.mrb[7].mxu0 }
 0x11a   :  { %v897_v34 = vpop.f32.mrb[7].mxu1  ;;  %v681_v35 = vadd.f32 %v873_v29, %v641_v24 }
 0x11c   :  { %v721_v36 = vadd.f32 %v895_v30, %v681_v35 }
 0x11e   :  { %v810_v37 = vmul.f32 -1.442695, %v721_v36 }
 0x120   :  { %971 = vpow2.f32 %v810_v37 }
 0x12a   :  { %v972_v38 = vpop.eup %971 }
 0x12b   :  { %v729_v39 = vadd.f32 1.0, %v972_v38 }
 0x12d   :  { %973 = vrcp.f32 %v729_v39 }
 0x137   :  { %v974_v40 = vpop.eup %973 }
 0x138   :  { %732 = vst [vmem:[%s1208_s3] sm:$0xff] %v974_v40 }

</bundles_post_ra>
